<compile_context>
chip_gen: v7x
topology: tpu7x:2x2x1
jax: 0.10.0
libtpu: 0.0.40
codegen_flags: <defaults>
</compile_context>

<pallas_src>
import numpy as np
import jax
import jax.numpy as jnp
from jax.experimental import pallas as pl
from jax.experimental.pallas import tpu as pltpu

OPT = dict(
    variable_lengths=1,
    vocab_size=32,
    word_embedding_size=16,
    word_vec_size=16,
    rnn_hidden_size=32,
    decode_bidirectional=0,
    word_drop_out=0.0,
    rnn_drop_out=0.0,
    rnn_num_layers=1,
    rnn_type="lstm",
)


# --------------------------- fused Pallas kernel ---------------------------

def _recon_loss_kernel(enc_ref, dec_ref, len_ref, vis_ref, table_ref, b_ref,
                       w_vis_ref, w_hh_ref, fc_w_ref, fc_b_ref, o_ref):
    # enc_ref/dec_ref: (N,1) int32 labels, time-major rows (n = t*Bp + b), N = T*Bp
    # len_ref: (Bp,1) int32 lengths (pad rows = 0); vis_ref: (Bp,Wv) f32 (permuted, see wrapper)
    # table_ref: (V,4H) folded relu(emb@mlp_w+mlp_b)@w_ih[:Wv]; b_ref: (1,4H)
    # w_vis_ref: (Wv,4H) visual half of w_ih; w_hh_ref: (H,4H) — gate column order [i,f,o,g]
    # fc_w_ref: (H,V); fc_b_ref: (1,V); o_ref: (1,1) f32 loss in SMEM
    f32 = jnp.float32
    N = enc_ref.shape[0]
    Bp = len_ref.shape[0]
    T = N // Bp
    V = table_ref.shape[0]
    H = w_hh_ref.shape[0]

    # ---- token one-hot @ folded table: embedding + mlp + input projection in one matmul ----
    col_v = jax.lax.broadcasted_iota(jnp.int32, (N, V), 1)
    onehot = (col_v == enc_ref[...]).astype(f32)                                    # (N, V)
    gates_x = jnp.dot(onehot, table_ref[...], preferred_element_type=f32) + b_ref[...]  # (N,4H)
    vis_g = jnp.dot(vis_ref[...], w_vis_ref[...], preferred_element_type=f32)           # (Bp,4H)

    # Per-step slabs are static, sublane-aligned (Bp, 4H=128) tiles.  The t==0 visual
    # contribution is folded in before the loop so every unrolled body is identical.
    x_slabs = [gates_x[t * Bp:(t + 1) * Bp, :] for t in range(T)]
    x_slabs[0] = x_slabs[0] + vis_g

    # ---- masked LSTM recurrence (pack_padded_sequence semantics), fully unrolled ----
    lens = len_ref[...]                                                              # (Bp, 1)
    w_hh = w_hh_ref[...]
    h = jnp.zeros((Bp, H), f32)
    c = jnp.zeros((Bp, H), f32)
    hs = []
    for t in range(T):                       # T static & small -> straight-line code
        g = x_slabs[t] + jnp.dot(h, w_hh, preferred_element_type=f32)
        sig = jax.nn.sigmoid(g[:, :3 * H])   # [i | f | o] in a single EUP pass
        i_g = sig[:, 0:H]
        f_g = sig[:, H:2 * H]
        o_g = sig[:, 2 * H:3 * H]
        g_g = jnp.tanh(g[:, 3 * H:])
        c_new = f_g * c + i_g * g_g
        h_new = o_g * jnp.tanh(c_new)
        valid = lens > t                     # (Bp,1): t < length(seq b); pad rows never valid
        hs.append(jnp.where(valid, h_new, 0.0))      # padded steps -> zeros (stays in vregs)
        h = jnp.where(valid, h_new, h)
        c = jnp.where(valid, c_new, c)

    # ---- fc -> per-row cross entropy -> masked mean (nothing touches VMEM scratch / HBM) ----
    hid = jnp.concatenate(hs, axis=0)                                                # (N, H)
    logits = jnp.dot(hid, fc_w_ref[...], preferred_element_type=f32) + fc_b_ref[...]
    mx = jnp.max(logits, axis=-1, keepdims=True)
    lse = mx + jnp.log(jnp.sum(jnp.exp(logits - mx), axis=-1, keepdims=True))        # (N, 1)
    labels = dec_ref[...]                                                            # (N, 1)
    picked = jnp.sum(jnp.where(col_v == labels, logits, 0.0), axis=-1, keepdims=True)
    ce = lse - picked
    msk = (labels != 0).astype(f32)          # label_mask derived in-kernel
    denom = jnp.maximum(jnp.sum(msk), 1.0)   # intentional guard vs reference's 0/0 NaN
    o_ref[0, 0] = jnp.sum(ce * msk) / denom


# --------------------------- module forward (wrapper) ---------------------------

def _reorder_gates_ifgo_to_ifog(w, H):
    """PyTorch LSTM gate columns [i, f, g, o] -> kernel order [i, f, o, g]."""
    return jnp.concatenate([w[..., :2 * H], w[..., 3 * H:4 * H], w[..., 2 * H:3 * H]], axis=-1)


def init_params(key, opt):
    ks = jax.random.split(key, 8)
    V, E = opt["vocab_size"], opt["word_embedding_size"]
    Wv, H = opt["word_vec_size"], opt["rnn_hidden_size"]
    Din = 2 * Wv
    # PyTorch conventions: gate columns [i, f, g, o]; lstm_b = b_ih + b_hh combined.
    return {
        "embedding": 0.1 * jax.random.normal(ks[0], (V, E), jnp.float32),
        "mlp_w_t":   0.1 * jax.random.normal(ks[1], (E, Wv), jnp.float32),
        "mlp_b":     0.1 * jax.random.normal(ks[2], (1, Wv), jnp.float32),
        "w_ih_t":    0.1 * jax.random.normal(ks[3], (Din, 4 * H), jnp.float32),
        "w_hh_t":    0.1 * jax.random.normal(ks[4], (H, 4 * H), jnp.float32),
        "lstm_b":    0.1 * jax.random.normal(ks[5], (1, 4 * H), jnp.float32),
        "fc_w_t":    0.1 * jax.random.normal(ks[6], (H, V), jnp.float32),
        "fc_b":      0.1 * jax.random.normal(ks[7], (1, V), jnp.float32),
    }


def reconstruction_loss(params, vis_att_fuse, enc_labels, dec_labels, opt=OPT):
    assert opt["variable_lengths"] > 0
    B, T = enc_labels.shape
    Wv = opt["word_vec_size"]
    H = opt["rnn_hidden_size"]
    V, E = params["embedding"].shape
    Bp = ((B + 7) // 8) * 8                   # pad batch to sublane width
    N = T * Bp

    enc_labels = enc_labels.astype(jnp.int32)
    dec_labels = dec_labels.astype(jnp.int32)

    # Per-sequence lengths (jittable; replaces numpy sort + host sync + `assert max==T`).
    lengths = jnp.sum((enc_labels != 0).astype(jnp.int32), axis=1)                  # (B,)

    # Reproduce the reference pairing exactly: the LSTM runs on length-sorted sequences but
    # vis_att_fuse is concatenated in ORIGINAL order, so after un-sorting, sequence b sees
    # vis_att_fuse[rank(b)].  The masked LSTM is batch-order independent, so only this tiny
    # (B, Wv) gather is needed — no sequence sort / output recover gather.
    sort_ixs = jnp.argsort(lengths)[::-1]
    recover_ixs = jnp.argsort(sort_ixs)
    vis_used = jnp.take(vis_att_fuse.astype(jnp.float32), recover_ixs, axis=0)      # (B, Wv)

    # Pad batch rows (length 0, labels 0, vis 0 -> fully masked inside the kernel).
    pad = Bp - B
    enc_p = jnp.pad(enc_labels, ((0, pad), (0, 0)))
    dec_p = jnp.pad(dec_labels, ((0, pad), (0, 0)))
    len_p = jnp.pad(lengths, ((0, pad),))
    vis_p = jnp.pad(vis_used, ((0, pad), (0, 0)))

    # Time-major label columns -> contiguous, sublane-aligned per-timestep rows in the kernel.
    enc_tm = jnp.transpose(enc_p).reshape(N, 1)
    dec_tm = jnp.transpose(dec_p).reshape(N, 1)
    len_col = len_p.reshape(Bp, 1)

    # Weight-prep (constant-folded under jit; once at weight-load time in deployment):
    # gate reorder + fold embedding/MLP/input-projection into a single (V, 4H) table.
    w_ih_k = _reorder_gates_ifgo_to_ifog(params["w_ih_t"], H)
    w_hh_k = _reorder_gates_ifgo_to_ifog(params["w_hh_t"], H)
    b_k = _reorder_gates_ifgo_to_ifog(params["lstm_b"], H)
    table = jax.nn.relu(params["embedding"] @ params["mlp_w_t"] + params["mlp_b"]) @ w_ih_k[:Wv, :]
    w_vis = w_ih_k[Wv:, :]                                                          # (Wv, 4H)

    def full(shape):
        return pl.BlockSpec(shape, lambda i: (0,) * len(shape))

    flops = 2 * (N * V * 4 * H + Bp * Wv * 4 * H + T * Bp * H * 4 * H + N * H * V)
    transcendentals = T * Bp * 5 * H + N * V
    bytes_accessed = 4 * (2 * N + Bp + Bp * Wv + V * 4 * H + 4 * H + Wv * 4 * H
                          + H * 4 * H + H * V + V + 1)

    loss = pl.pallas_call(
        _recon_loss_kernel,
        out_shape=jax.ShapeDtypeStruct((1, 1), jnp.float32),
        grid=(1,),
        in_specs=[full((N, 1)), full((N, 1)), full((Bp, 1)), full((Bp, Wv)),
                  full((V, 4 * H)), full((1, 4 * H)), full((Wv, 4 * H)),
                  full((H, 4 * H)), full((H, V)), full((1, V))],
        out_specs=pl.BlockSpec(memory_space=pltpu.MemorySpace.SMEM),   # scalar loss via SMEM
        compiler_params=pltpu.CompilerParams(dimension_semantics=("arbitrary",)),
        cost_estimate=pl.CostEstimate(flops=flops, transcendentals=transcendentals,
                                      bytes_accessed=bytes_accessed),
    )(enc_tm, dec_tm, len_col, vis_p,
      table, b_k, w_vis, w_hh_k, params["fc_w_t"], params["fc_b"])
    return loss[0, 0]


# --------------------------- pure-JAX reference (validation only) ---------------------------

def reference_loss(params, vis_att_fuse, enc_labels, dec_labels, opt=OPT):
    """Direct mirror of the PyTorch module (sorted pack_padded path, PyTorch gate order)."""
    B, T = enc_labels.shape
    Wv, H = opt["word_vec_size"], opt["rnn_hidden_size"]
    lengths = np.asarray(jnp.sum(enc_labels != 0, axis=1))
    sort_ixs = np.argsort(lengths, kind="stable")[::-1]
    s2r = {int(s): r for r, s in enumerate(sort_ixs)}
    recover_ixs = np.array([s2r[s] for s in range(B)])
    sorted_lens = jnp.asarray(lengths[sort_ixs])

    input_labels = enc_labels[np.asarray(sort_ixs)]
    embedded = params["embedding"][input_labels]                                    # (B, T, E)
    mlp = jax.nn.relu(embedded @ params["mlp_w_t"] + params["mlp_b"])               # (B, T, Wv)
    vis_seq = jnp.concatenate(
        [vis_att_fuse[:, None, :], jnp.zeros((B, T - 1, Wv), jnp.float32)], axis=1)
    x = jnp.concatenate([mlp, vis_seq], axis=2)                                     # (B, T, 2Wv)

    w_ih_t, w_hh_t, b = params["w_ih_t"], params["w_hh_t"], params["lstm_b"]        # [i,f,g,o]
    h = jnp.zeros((B, H), jnp.float32)
    c = jnp.zeros((B, H), jnp.float32)
    outs = []
    for t in range(T):
        g = x[:, t, :] @ w_ih_t + h @ w_hh_t + b
        i = jax.nn.sigmoid(g[:, 0:H]); f = jax.nn.sigmoid(g[:, H:2 * H])
        gg = jnp.tanh(g[:, 2 * H:3 * H]); o = jax.nn.sigmoid(g[:, 3 * H:4 * H])
        c_new = f * c + i * gg
        h_new = o * jnp.tanh(c_new)
        valid = sorted_lens[:, None] > t
        outs.append(jnp.where(valid, h_new, 0.0))
        h = jnp.where(valid, h_new, h)
        c = jnp.where(valid, c_new, c)
    out = jnp.stack(outs, axis=1)[recover_ixs]                                      # (B, T, H)

    logits = out.reshape(B * T, H) @ params["fc_w_t"] + params["fc_b"]
    labels = dec_labels.reshape(-1)
    lse = jax.scipy.special.logsumexp(logits, axis=-1)
    picked = logits[jnp.arange(B * T), labels]
    ce = lse - picked
    mask = (labels != 0).astype(jnp.float32)
    return jnp.sum(ce * mask) / jnp.sum(mask)


# --------------------------- demo ---------------------------

if __name__ == "__main__":
    key = jax.random.PRNGKey(0)
    kp, kv, ke, kd = jax.random.split(key, 4)
    params = init_params(kp, OPT)

    B, T = 4, 8
    lengths = jnp.array([8, 5, 3, 6], dtype=jnp.int32)     # variable lengths
    vis_att_fuse = jax.random.normal(kv, (B, OPT["word_vec_size"]), jnp.float32)
    enc = jax.random.randint(ke, (B, T), 1, OPT["vocab_size"], dtype=jnp.int32)
    dec = jax.random.randint(kd, (B, T), 1, OPT["vocab_size"], dtype=jnp.int32)
    pos = jnp.arange(T, dtype=jnp.int32)[None, :]
    len_mask = pos < lengths[:, None]
    enc_labels = jnp.where(len_mask, enc, 0)
    dec_labels = jnp.where(len_mask, dec, 0)

    loss_fn = jax.jit(reconstruction_loss)
    loss = loss_fn(params, vis_att_fuse, enc_labels, dec_labels)
    jax.block_until_ready(loss)

    ref = reference_loss(params, vis_att_fuse, enc_labels, dec_labels)
    np.testing.assert_allclose(np.asarray(loss), np.asarray(ref), rtol=1e-3, atol=1e-4)
    print("KERNEL_OK")
</pallas_src>

<mosaic_0001>
module attributes {stable_mosaic.version = 11 : i64} {
  func.func @_recon_loss_kernel(%arg0: i32, %arg1: memref<64x1xi32, #tpu.memory_space<vmem>>, %arg2: memref<64x1xi32, #tpu.memory_space<vmem>>, %arg3: memref<8x1xi32, #tpu.memory_space<vmem>>, %arg4: memref<8x16xf32, #tpu.memory_space<vmem>>, %arg5: memref<32x128xf32, #tpu.memory_space<vmem>>, %arg6: memref<1x128xf32, #tpu.memory_space<vmem>>, %arg7: memref<16x128xf32, #tpu.memory_space<vmem>>, %arg8: memref<32x128xf32, #tpu.memory_space<vmem>>, %arg9: memref<32x32xf32, #tpu.memory_space<vmem>>, %arg10: memref<1x32xf32, #tpu.memory_space<vmem>>, %arg11: memref<1x1xf32, #tpu.memory_space<smem>>) attributes {dimension_semantics = [#tpu.dimension_semantics<arbitrary>], iteration_bounds = array<i64: 1>, scalar_prefetch = 0 : i64, scratch_operands = 0 : i64, tpu.core_type = #tpu.core_type<tc>, window_params = [{pipeline_mode = #tpu.pipeline_mode<synchronous>, transform_indices = @transform_0, window_bounds = array<i64: 64, 1>}, {pipeline_mode = #tpu.pipeline_mode<synchronous>, transform_indices = @transform_1, window_bounds = array<i64: 64, 1>}, {pipeline_mode = #tpu.pipeline_mode<synchronous>, transform_indices = @transform_2, window_bounds = array<i64: 8, 1>}, {pipeline_mode = #tpu.pipeline_mode<synchronous>, transform_indices = @transform_3, window_bounds = array<i64: 8, 16>}, {pipeline_mode = #tpu.pipeline_mode<synchronous>, transform_indices = @transform_4, window_bounds = array<i64: 32, 128>}, {pipeline_mode = #tpu.pipeline_mode<synchronous>, transform_indices = @transform_5, window_bounds = array<i64: 1, 128>}, {pipeline_mode = #tpu.pipeline_mode<synchronous>, transform_indices = @transform_6, window_bounds = array<i64: 16, 128>}, {pipeline_mode = #tpu.pipeline_mode<synchronous>, transform_indices = @transform_7, window_bounds = array<i64: 32, 128>}, {pipeline_mode = #tpu.pipeline_mode<synchronous>, transform_indices = @transform_8, window_bounds = array<i64: 32, 32>}, {pipeline_mode = #tpu.pipeline_mode<synchronous>, transform_indices = @transform_9, window_bounds = array<i64: 1, 32>}, {transform_indices = @transform_10, window_bounds = array<i64: 1, 1>}]} {
    %0 = tpu.iota {dimensions = array<i32: 1>} : vector<64x32xi32>
    %c0 = arith.constant 0 : index
    %c0_0 = arith.constant 0 : index
    %1 = vector.load %arg1[%c0, %c0_0] : memref<64x1xi32, #tpu.memory_space<vmem>>, vector<64x1xi32>
    %2 = vector.broadcast %1 : vector<64x1xi32> to vector<64x32xi32>
    %3 = arith.cmpi eq, %0, %2 : vector<64x32xi32>
    %4 = arith.extui %3 : vector<64x32xi1> to vector<64x32xi32>
    %5 = arith.sitofp %4 : vector<64x32xi32> to vector<64x32xf32>
    %c0_1 = arith.constant 0 : index
    %c0_2 = arith.constant 0 : index
    %6 = vector.load %arg5[%c0_1, %c0_2] : memref<32x128xf32, #tpu.memory_space<vmem>>, vector<32x128xf32>
    %cst = arith.constant dense<0.000000e+00> : vector<64x128xf32>
    %7 = tpu.matmul %5, %6, %cst {dimension_numbers = #tpu.dot_dimension_numbers<[1], [0], [0], [1], [0, 0, 1, 1], [], []>} : vector<64x32xf32>, vector<32x128xf32>, vector<64x128xf32> -> vector<64x128xf32>
    %c0_3 = arith.constant 0 : index
    %c0_4 = arith.constant 0 : index
    %8 = vector.load %arg6[%c0_3, %c0_4] : memref<1x128xf32, #tpu.memory_space<vmem>>, vector<1x128xf32>
    %9 = vector.broadcast %8 : vector<1x128xf32> to vector<64x128xf32>
    %10 = arith.addf %7, %9 : vector<64x128xf32>
    %c0_5 = arith.constant 0 : index
    %c0_6 = arith.constant 0 : index
    %11 = vector.load %arg4[%c0_5, %c0_6] : memref<8x16xf32, #tpu.memory_space<vmem>>, vector<8x16xf32>
    %c0_7 = arith.constant 0 : index
    %c0_8 = arith.constant 0 : index
    %12 = vector.load %arg7[%c0_7, %c0_8] : memref<16x128xf32, #tpu.memory_space<vmem>>, vector<16x128xf32>
    %cst_9 = arith.constant dense<0.000000e+00> : vector<8x128xf32>
    %13 = tpu.matmul %11, %12, %cst_9 {dimension_numbers = #tpu.dot_dimension_numbers<[1], [0], [0], [1], [0, 0, 1, 1], [], []>} : vector<8x16xf32>, vector<16x128xf32>, vector<8x128xf32> -> vector<8x128xf32>
    %14 = vector.extract_strided_slice %10 {offsets = [0, 0], sizes = [8, 128], strides = [1, 1]} : vector<64x128xf32> to vector<8x128xf32>
    %15 = vector.extract_strided_slice %10 {offsets = [8, 0], sizes = [8, 128], strides = [1, 1]} : vector<64x128xf32> to vector<8x128xf32>
    %16 = vector.extract_strided_slice %10 {offsets = [16, 0], sizes = [8, 128], strides = [1, 1]} : vector<64x128xf32> to vector<8x128xf32>
    %17 = vector.extract_strided_slice %10 {offsets = [24, 0], sizes = [8, 128], strides = [1, 1]} : vector<64x128xf32> to vector<8x128xf32>
    %18 = vector.extract_strided_slice %10 {offsets = [32, 0], sizes = [8, 128], strides = [1, 1]} : vector<64x128xf32> to vector<8x128xf32>
    %19 = vector.extract_strided_slice %10 {offsets = [40, 0], sizes = [8, 128], strides = [1, 1]} : vector<64x128xf32> to vector<8x128xf32>
    %20 = vector.extract_strided_slice %10 {offsets = [48, 0], sizes = [8, 128], strides = [1, 1]} : vector<64x128xf32> to vector<8x128xf32>
    %21 = vector.extract_strided_slice %10 {offsets = [56, 0], sizes = [8, 128], strides = [1, 1]} : vector<64x128xf32> to vector<8x128xf32>
    %22 = arith.addf %14, %13 : vector<8x128xf32>
    %c0_10 = arith.constant 0 : index
    %c0_11 = arith.constant 0 : index
    %23 = vector.load %arg3[%c0_10, %c0_11] : memref<8x1xi32, #tpu.memory_space<vmem>>, vector<8x1xi32>
    %c0_12 = arith.constant 0 : index
    %c0_13 = arith.constant 0 : index
    %24 = vector.load %arg8[%c0_12, %c0_13] : memref<32x128xf32, #tpu.memory_space<vmem>>, vector<32x128xf32>
    %cst_14 = arith.constant 0.000000e+00 : f32
    %25 = vector.broadcast %cst_14 : f32 to vector<8x32xf32>
    %cst_15 = arith.constant 0.000000e+00 : f32
    %26 = vector.broadcast %cst_15 : f32 to vector<8x32xf32>
    %cst_16 = arith.constant dense<0.000000e+00> : vector<8x128xf32>
    %27 = tpu.matmul %25, %24, %cst_16 {dimension_numbers = #tpu.dot_dimension_numbers<[1], [0], [0], [1], [0, 0, 1, 1], [], []>} : vector<8x32xf32>, vector<32x128xf32>, vector<8x128xf32> -> vector<8x128xf32>
    %28 = arith.addf %22, %27 : vector<8x128xf32>
    %29 = vector.extract_strided_slice %28 {offsets = [0, 0], sizes = [8, 96], strides = [1, 1]} : vector<8x128xf32> to vector<8x96xf32>
    %30 = arith.negf %29 : vector<8x96xf32>
    %31 = math.exp %30 : vector<8x96xf32>
    %cst_17 = arith.constant 1.000000e+00 : f32
    %32 = vector.broadcast %cst_17 : f32 to vector<8x96xf32>
    %33 = arith.addf %32, %31 : vector<8x96xf32>
    %34 = arith.divf %32, %33 : vector<8x96xf32>
    %35 = vector.extract_strided_slice %34 {offsets = [0, 0], sizes = [8, 32], strides = [1, 1]} : vector<8x96xf32> to vector<8x32xf32>
    %36 = vector.extract_strided_slice %34 {offsets = [0, 32], sizes = [8, 32], strides = [1, 1]} : vector<8x96xf32> to vector<8x32xf32>
    %37 = vector.extract_strided_slice %34 {offsets = [0, 64], sizes = [8, 32], strides = [1, 1]} : vector<8x96xf32> to vector<8x32xf32>
    %38 = vector.extract_strided_slice %28 {offsets = [0, 96], sizes = [8, 32], strides = [1, 1]} : vector<8x128xf32> to vector<8x32xf32>
    %39 = math.tanh %38 : vector<8x32xf32>
    %40 = arith.mulf %36, %26 : vector<8x32xf32>
    %41 = arith.mulf %35, %39 : vector<8x32xf32>
    %42 = arith.addf %40, %41 : vector<8x32xf32>
    %43 = math.tanh %42 : vector<8x32xf32>
    %44 = arith.mulf %37, %43 : vector<8x32xf32>
    %c0_i32 = arith.constant 0 : i32
    %45 = vector.broadcast %c0_i32 : i32 to vector<8x1xi32>
    %46 = arith.cmpi sgt, %23, %45 : vector<8x1xi32>
    %cst_18 = arith.constant 0.000000e+00 : f32
    %47 = vector.shape_cast %46 : vector<8x1xi1> to vector<8x1xi1>
    %48 = vector.broadcast %47 : vector<8x1xi1> to vector<8x32xi1>
    %49 = vector.broadcast %cst_18 : f32 to vector<8x32xf32>
    %50 = arith.select %48, %44, %49 : vector<8x32xi1>, vector<8x32xf32>
    %51 = vector.shape_cast %46 : vector<8x1xi1> to vector<8x1xi1>
    %52 = vector.broadcast %51 : vector<8x1xi1> to vector<8x32xi1>
    %53 = arith.select %52, %44, %25 : vector<8x32xi1>, vector<8x32xf32>
    %54 = vector.shape_cast %46 : vector<8x1xi1> to vector<8x1xi1>
    %55 = vector.broadcast %54 : vector<8x1xi1> to vector<8x32xi1>
    %56 = arith.select %55, %42, %26 : vector<8x32xi1>, vector<8x32xf32>
    %cst_19 = arith.constant dense<0.000000e+00> : vector<8x128xf32>
    %57 = tpu.matmul %53, %24, %cst_19 {dimension_numbers = #tpu.dot_dimension_numbers<[1], [0], [0], [1], [0, 0, 1, 1], [], []>} : vector<8x32xf32>, vector<32x128xf32>, vector<8x128xf32> -> vector<8x128xf32>
    %58 = arith.addf %15, %57 : vector<8x128xf32>
    %59 = vector.extract_strided_slice %58 {offsets = [0, 0], sizes = [8, 96], strides = [1, 1]} : vector<8x128xf32> to vector<8x96xf32>
    %60 = arith.negf %59 : vector<8x96xf32>
    %61 = math.exp %60 : vector<8x96xf32>
    %cst_20 = arith.constant 1.000000e+00 : f32
    %62 = vector.broadcast %cst_20 : f32 to vector<8x96xf32>
    %63 = arith.addf %62, %61 : vector<8x96xf32>
    %64 = arith.divf %62, %63 : vector<8x96xf32>
    %65 = vector.extract_strided_slice %64 {offsets = [0, 0], sizes = [8, 32], strides = [1, 1]} : vector<8x96xf32> to vector<8x32xf32>
    %66 = vector.extract_strided_slice %64 {offsets = [0, 32], sizes = [8, 32], strides = [1, 1]} : vector<8x96xf32> to vector<8x32xf32>
    %67 = vector.extract_strided_slice %64 {offsets = [0, 64], sizes = [8, 32], strides = [1, 1]} : vector<8x96xf32> to vector<8x32xf32>
    %68 = vector.extract_strided_slice %58 {offsets = [0, 96], sizes = [8, 32], strides = [1, 1]} : vector<8x128xf32> to vector<8x32xf32>
    %69 = math.tanh %68 : vector<8x32xf32>
    %70 = arith.mulf %66, %56 : vector<8x32xf32>
    %71 = arith.mulf %65, %69 : vector<8x32xf32>
    %72 = arith.addf %70, %71 : vector<8x32xf32>
    %73 = math.tanh %72 : vector<8x32xf32>
    %74 = arith.mulf %67, %73 : vector<8x32xf32>
    %c1_i32 = arith.constant 1 : i32
    %75 = vector.broadcast %c1_i32 : i32 to vector<8x1xi32>
    %76 = arith.cmpi sgt, %23, %75 : vector<8x1xi32>
    %cst_21 = arith.constant 0.000000e+00 : f32
    %77 = vector.shape_cast %76 : vector<8x1xi1> to vector<8x1xi1>
    %78 = vector.broadcast %77 : vector<8x1xi1> to vector<8x32xi1>
    %79 = vector.broadcast %cst_21 : f32 to vector<8x32xf32>
    %80 = arith.select %78, %74, %79 : vector<8x32xi1>, vector<8x32xf32>
    %81 = vector.shape_cast %76 : vector<8x1xi1> to vector<8x1xi1>
    %82 = vector.broadcast %81 : vector<8x1xi1> to vector<8x32xi1>
    %83 = arith.select %82, %74, %53 : vector<8x32xi1>, vector<8x32xf32>
    %84 = vector.shape_cast %76 : vector<8x1xi1> to vector<8x1xi1>
    %85 = vector.broadcast %84 : vector<8x1xi1> to vector<8x32xi1>
    %86 = arith.select %85, %72, %56 : vector<8x32xi1>, vector<8x32xf32>
    %cst_22 = arith.constant dense<0.000000e+00> : vector<8x128xf32>
    %87 = tpu.matmul %83, %24, %cst_22 {dimension_numbers = #tpu.dot_dimension_numbers<[1], [0], [0], [1], [0, 0, 1, 1], [], []>} : vector<8x32xf32>, vector<32x128xf32>, vector<8x128xf32> -> vector<8x128xf32>
    %88 = arith.addf %16, %87 : vector<8x128xf32>
    %89 = vector.extract_strided_slice %88 {offsets = [0, 0], sizes = [8, 96], strides = [1, 1]} : vector<8x128xf32> to vector<8x96xf32>
    %90 = arith.negf %89 : vector<8x96xf32>
    %91 = math.exp %90 : vector<8x96xf32>
    %cst_23 = arith.constant 1.000000e+00 : f32
    %92 = vector.broadcast %cst_23 : f32 to vector<8x96xf32>
    %93 = arith.addf %92, %91 : vector<8x96xf32>
    %94 = arith.divf %92, %93 : vector<8x96xf32>
    %95 = vector.extract_strided_slice %94 {offsets = [0, 0], sizes = [8, 32], strides = [1, 1]} : vector<8x96xf32> to vector<8x32xf32>
    %96 = vector.extract_strided_slice %94 {offsets = [0, 32], sizes = [8, 32], strides = [1, 1]} : vector<8x96xf32> to vector<8x32xf32>
    %97 = vector.extract_strided_slice %94 {offsets = [0, 64], sizes = [8, 32], strides = [1, 1]} : vector<8x96xf32> to vector<8x32xf32>
    %98 = vector.extract_strided_slice %88 {offsets = [0, 96], sizes = [8, 32], strides = [1, 1]} : vector<8x128xf32> to vector<8x32xf32>
    %99 = math.tanh %98 : vector<8x32xf32>
    %100 = arith.mulf %96, %86 : vector<8x32xf32>
    %101 = arith.mulf %95, %99 : vector<8x32xf32>
    %102 = arith.addf %100, %101 : vector<8x32xf32>
    %103 = math.tanh %102 : vector<8x32xf32>
    %104 = arith.mulf %97, %103 : vector<8x32xf32>
    %c2_i32 = arith.constant 2 : i32
    %105 = vector.broadcast %c2_i32 : i32 to vector<8x1xi32>
    %106 = arith.cmpi sgt, %23, %105 : vector<8x1xi32>
    %cst_24 = arith.constant 0.000000e+00 : f32
    %107 = vector.shape_cast %106 : vector<8x1xi1> to vector<8x1xi1>
    %108 = vector.broadcast %107 : vector<8x1xi1> to vector<8x32xi1>
    %109 = vector.broadcast %cst_24 : f32 to vector<8x32xf32>
    %110 = arith.select %108, %104, %109 : vector<8x32xi1>, vector<8x32xf32>
    %111 = vector.shape_cast %106 : vector<8x1xi1> to vector<8x1xi1>
    %112 = vector.broadcast %111 : vector<8x1xi1> to vector<8x32xi1>
    %113 = arith.select %112, %104, %83 : vector<8x32xi1>, vector<8x32xf32>
    %114 = vector.shape_cast %106 : vector<8x1xi1> to vector<8x1xi1>
    %115 = vector.broadcast %114 : vector<8x1xi1> to vector<8x32xi1>
    %116 = arith.select %115, %102, %86 : vector<8x32xi1>, vector<8x32xf32>
    %cst_25 = arith.constant dense<0.000000e+00> : vector<8x128xf32>
    %117 = tpu.matmul %113, %24, %cst_25 {dimension_numbers = #tpu.dot_dimension_numbers<[1], [0], [0], [1], [0, 0, 1, 1], [], []>} : vector<8x32xf32>, vector<32x128xf32>, vector<8x128xf32> -> vector<8x128xf32>
    %118 = arith.addf %17, %117 : vector<8x128xf32>
    %119 = vector.extract_strided_slice %118 {offsets = [0, 0], sizes = [8, 96], strides = [1, 1]} : vector<8x128xf32> to vector<8x96xf32>
    %120 = arith.negf %119 : vector<8x96xf32>
    %121 = math.exp %120 : vector<8x96xf32>
    %cst_26 = arith.constant 1.000000e+00 : f32
    %122 = vector.broadcast %cst_26 : f32 to vector<8x96xf32>
    %123 = arith.addf %122, %121 : vector<8x96xf32>
    %124 = arith.divf %122, %123 : vector<8x96xf32>
    %125 = vector.extract_strided_slice %124 {offsets = [0, 0], sizes = [8, 32], strides = [1, 1]} : vector<8x96xf32> to vector<8x32xf32>
    %126 = vector.extract_strided_slice %124 {offsets = [0, 32], sizes = [8, 32], strides = [1, 1]} : vector<8x96xf32> to vector<8x32xf32>
    %127 = vector.extract_strided_slice %124 {offsets = [0, 64], sizes = [8, 32], strides = [1, 1]} : vector<8x96xf32> to vector<8x32xf32>
    %128 = vector.extract_strided_slice %118 {offsets = [0, 96], sizes = [8, 32], strides = [1, 1]} : vector<8x128xf32> to vector<8x32xf32>
    %129 = math.tanh %128 : vector<8x32xf32>
    %130 = arith.mulf %126, %116 : vector<8x32xf32>
    %131 = arith.mulf %125, %129 : vector<8x32xf32>
    %132 = arith.addf %130, %131 : vector<8x32xf32>
    %133 = math.tanh %132 : vector<8x32xf32>
    %134 = arith.mulf %127, %133 : vector<8x32xf32>
    %c3_i32 = arith.constant 3 : i32
    %135 = vector.broadcast %c3_i32 : i32 to vector<8x1xi32>
    %136 = arith.cmpi sgt, %23, %135 : vector<8x1xi32>
    %cst_27 = arith.constant 0.000000e+00 : f32
    %137 = vector.shape_cast %136 : vector<8x1xi1> to vector<8x1xi1>
    %138 = vector.broadcast %137 : vector<8x1xi1> to vector<8x32xi1>
    %139 = vector.broadcast %cst_27 : f32 to vector<8x32xf32>
    %140 = arith.select %138, %134, %139 : vector<8x32xi1>, vector<8x32xf32>
    %141 = vector.shape_cast %136 : vector<8x1xi1> to vector<8x1xi1>
    %142 = vector.broadcast %141 : vector<8x1xi1> to vector<8x32xi1>
    %143 = arith.select %142, %134, %113 : vector<8x32xi1>, vector<8x32xf32>
    %144 = vector.shape_cast %136 : vector<8x1xi1> to vector<8x1xi1>
    %145 = vector.broadcast %144 : vector<8x1xi1> to vector<8x32xi1>
    %146 = arith.select %145, %132, %116 : vector<8x32xi1>, vector<8x32xf32>
    %cst_28 = arith.constant dense<0.000000e+00> : vector<8x128xf32>
    %147 = tpu.matmul %143, %24, %cst_28 {dimension_numbers = #tpu.dot_dimension_numbers<[1], [0], [0], [1], [0, 0, 1, 1], [], []>} : vector<8x32xf32>, vector<32x128xf32>, vector<8x128xf32> -> vector<8x128xf32>
    %148 = arith.addf %18, %147 : vector<8x128xf32>
    %149 = vector.extract_strided_slice %148 {offsets = [0, 0], sizes = [8, 96], strides = [1, 1]} : vector<8x128xf32> to vector<8x96xf32>
    %150 = arith.negf %149 : vector<8x96xf32>
    %151 = math.exp %150 : vector<8x96xf32>
    %cst_29 = arith.constant 1.000000e+00 : f32
    %152 = vector.broadcast %cst_29 : f32 to vector<8x96xf32>
    %153 = arith.addf %152, %151 : vector<8x96xf32>
    %154 = arith.divf %152, %153 : vector<8x96xf32>
    %155 = vector.extract_strided_slice %154 {offsets = [0, 0], sizes = [8, 32], strides = [1, 1]} : vector<8x96xf32> to vector<8x32xf32>
    %156 = vector.extract_strided_slice %154 {offsets = [0, 32], sizes = [8, 32], strides = [1, 1]} : vector<8x96xf32> to vector<8x32xf32>
    %157 = vector.extract_strided_slice %154 {offsets = [0, 64], sizes = [8, 32], strides = [1, 1]} : vector<8x96xf32> to vector<8x32xf32>
    %158 = vector.extract_strided_slice %148 {offsets = [0, 96], sizes = [8, 32], strides = [1, 1]} : vector<8x128xf32> to vector<8x32xf32>
    %159 = math.tanh %158 : vector<8x32xf32>
    %160 = arith.mulf %156, %146 : vector<8x32xf32>
    %161 = arith.mulf %155, %159 : vector<8x32xf32>
    %162 = arith.addf %160, %161 : vector<8x32xf32>
    %163 = math.tanh %162 : vector<8x32xf32>
    %164 = arith.mulf %157, %163 : vector<8x32xf32>
    %c4_i32 = arith.constant 4 : i32
    %165 = vector.broadcast %c4_i32 : i32 to vector<8x1xi32>
    %166 = arith.cmpi sgt, %23, %165 : vector<8x1xi32>
    %cst_30 = arith.constant 0.000000e+00 : f32
    %167 = vector.shape_cast %166 : vector<8x1xi1> to vector<8x1xi1>
    %168 = vector.broadcast %167 : vector<8x1xi1> to vector<8x32xi1>
    %169 = vector.broadcast %cst_30 : f32 to vector<8x32xf32>
    %170 = arith.select %168, %164, %169 : vector<8x32xi1>, vector<8x32xf32>
    %171 = vector.shape_cast %166 : vector<8x1xi1> to vector<8x1xi1>
    %172 = vector.broadcast %171 : vector<8x1xi1> to vector<8x32xi1>
    %173 = arith.select %172, %164, %143 : vector<8x32xi1>, vector<8x32xf32>
    %174 = vector.shape_cast %166 : vector<8x1xi1> to vector<8x1xi1>
    %175 = vector.broadcast %174 : vector<8x1xi1> to vector<8x32xi1>
    %176 = arith.select %175, %162, %146 : vector<8x32xi1>, vector<8x32xf32>
    %cst_31 = arith.constant dense<0.000000e+00> : vector<8x128xf32>
    %177 = tpu.matmul %173, %24, %cst_31 {dimension_numbers = #tpu.dot_dimension_numbers<[1], [0], [0], [1], [0, 0, 1, 1], [], []>} : vector<8x32xf32>, vector<32x128xf32>, vector<8x128xf32> -> vector<8x128xf32>
    %178 = arith.addf %19, %177 : vector<8x128xf32>
    %179 = vector.extract_strided_slice %178 {offsets = [0, 0], sizes = [8, 96], strides = [1, 1]} : vector<8x128xf32> to vector<8x96xf32>
    %180 = arith.negf %179 : vector<8x96xf32>
    %181 = math.exp %180 : vector<8x96xf32>
    %cst_32 = arith.constant 1.000000e+00 : f32
    %182 = vector.broadcast %cst_32 : f32 to vector<8x96xf32>
    %183 = arith.addf %182, %181 : vector<8x96xf32>
    %184 = arith.divf %182, %183 : vector<8x96xf32>
    %185 = vector.extract_strided_slice %184 {offsets = [0, 0], sizes = [8, 32], strides = [1, 1]} : vector<8x96xf32> to vector<8x32xf32>
    %186 = vector.extract_strided_slice %184 {offsets = [0, 32], sizes = [8, 32], strides = [1, 1]} : vector<8x96xf32> to vector<8x32xf32>
    %187 = vector.extract_strided_slice %184 {offsets = [0, 64], sizes = [8, 32], strides = [1, 1]} : vector<8x96xf32> to vector<8x32xf32>
    %188 = vector.extract_strided_slice %178 {offsets = [0, 96], sizes = [8, 32], strides = [1, 1]} : vector<8x128xf32> to vector<8x32xf32>
    %189 = math.tanh %188 : vector<8x32xf32>
    %190 = arith.mulf %186, %176 : vector<8x32xf32>
    %191 = arith.mulf %185, %189 : vector<8x32xf32>
    %192 = arith.addf %190, %191 : vector<8x32xf32>
    %193 = math.tanh %192 : vector<8x32xf32>
    %194 = arith.mulf %187, %193 : vector<8x32xf32>
    %c5_i32 = arith.constant 5 : i32
    %195 = vector.broadcast %c5_i32 : i32 to vector<8x1xi32>
    %196 = arith.cmpi sgt, %23, %195 : vector<8x1xi32>
    %cst_33 = arith.constant 0.000000e+00 : f32
    %197 = vector.shape_cast %196 : vector<8x1xi1> to vector<8x1xi1>
    %198 = vector.broadcast %197 : vector<8x1xi1> to vector<8x32xi1>
    %199 = vector.broadcast %cst_33 : f32 to vector<8x32xf32>
    %200 = arith.select %198, %194, %199 : vector<8x32xi1>, vector<8x32xf32>
    %201 = vector.shape_cast %196 : vector<8x1xi1> to vector<8x1xi1>
    %202 = vector.broadcast %201 : vector<8x1xi1> to vector<8x32xi1>
    %203 = arith.select %202, %194, %173 : vector<8x32xi1>, vector<8x32xf32>
    %204 = vector.shape_cast %196 : vector<8x1xi1> to vector<8x1xi1>
    %205 = vector.broadcast %204 : vector<8x1xi1> to vector<8x32xi1>
    %206 = arith.select %205, %192, %176 : vector<8x32xi1>, vector<8x32xf32>
    %cst_34 = arith.constant dense<0.000000e+00> : vector<8x128xf32>
    %207 = tpu.matmul %203, %24, %cst_34 {dimension_numbers = #tpu.dot_dimension_numbers<[1], [0], [0], [1], [0, 0, 1, 1], [], []>} : vector<8x32xf32>, vector<32x128xf32>, vector<8x128xf32> -> vector<8x128xf32>
    %208 = arith.addf %20, %207 : vector<8x128xf32>
    %209 = vector.extract_strided_slice %208 {offsets = [0, 0], sizes = [8, 96], strides = [1, 1]} : vector<8x128xf32> to vector<8x96xf32>
    %210 = arith.negf %209 : vector<8x96xf32>
    %211 = math.exp %210 : vector<8x96xf32>
    %cst_35 = arith.constant 1.000000e+00 : f32
    %212 = vector.broadcast %cst_35 : f32 to vector<8x96xf32>
    %213 = arith.addf %212, %211 : vector<8x96xf32>
    %214 = arith.divf %212, %213 : vector<8x96xf32>
    %215 = vector.extract_strided_slice %214 {offsets = [0, 0], sizes = [8, 32], strides = [1, 1]} : vector<8x96xf32> to vector<8x32xf32>
    %216 = vector.extract_strided_slice %214 {offsets = [0, 32], sizes = [8, 32], strides = [1, 1]} : vector<8x96xf32> to vector<8x32xf32>
    %217 = vector.extract_strided_slice %214 {offsets = [0, 64], sizes = [8, 32], strides = [1, 1]} : vector<8x96xf32> to vector<8x32xf32>
    %218 = vector.extract_strided_slice %208 {offsets = [0, 96], sizes = [8, 32], strides = [1, 1]} : vector<8x128xf32> to vector<8x32xf32>
    %219 = math.tanh %218 : vector<8x32xf32>
    %220 = arith.mulf %216, %206 : vector<8x32xf32>
    %221 = arith.mulf %215, %219 : vector<8x32xf32>
    %222 = arith.addf %220, %221 : vector<8x32xf32>
    %223 = math.tanh %222 : vector<8x32xf32>
    %224 = arith.mulf %217, %223 : vector<8x32xf32>
    %c6_i32 = arith.constant 6 : i32
    %225 = vector.broadcast %c6_i32 : i32 to vector<8x1xi32>
    %226 = arith.cmpi sgt, %23, %225 : vector<8x1xi32>
    %cst_36 = arith.constant 0.000000e+00 : f32
    %227 = vector.shape_cast %226 : vector<8x1xi1> to vector<8x1xi1>
    %228 = vector.broadcast %227 : vector<8x1xi1> to vector<8x32xi1>
    %229 = vector.broadcast %cst_36 : f32 to vector<8x32xf32>
    %230 = arith.select %228, %224, %229 : vector<8x32xi1>, vector<8x32xf32>
    %231 = vector.shape_cast %226 : vector<8x1xi1> to vector<8x1xi1>
    %232 = vector.broadcast %231 : vector<8x1xi1> to vector<8x32xi1>
    %233 = arith.select %232, %224, %203 : vector<8x32xi1>, vector<8x32xf32>
    %234 = vector.shape_cast %226 : vector<8x1xi1> to vector<8x1xi1>
    %235 = vector.broadcast %234 : vector<8x1xi1> to vector<8x32xi1>
    %236 = arith.select %235, %222, %206 : vector<8x32xi1>, vector<8x32xf32>
    %cst_37 = arith.constant dense<0.000000e+00> : vector<8x128xf32>
    %237 = tpu.matmul %233, %24, %cst_37 {dimension_numbers = #tpu.dot_dimension_numbers<[1], [0], [0], [1], [0, 0, 1, 1], [], []>} : vector<8x32xf32>, vector<32x128xf32>, vector<8x128xf32> -> vector<8x128xf32>
    %238 = arith.addf %21, %237 : vector<8x128xf32>
    %239 = vector.extract_strided_slice %238 {offsets = [0, 0], sizes = [8, 96], strides = [1, 1]} : vector<8x128xf32> to vector<8x96xf32>
    %240 = arith.negf %239 : vector<8x96xf32>
    %241 = math.exp %240 : vector<8x96xf32>
    %cst_38 = arith.constant 1.000000e+00 : f32
    %242 = vector.broadcast %cst_38 : f32 to vector<8x96xf32>
    %243 = arith.addf %242, %241 : vector<8x96xf32>
    %244 = arith.divf %242, %243 : vector<8x96xf32>
    %245 = vector.extract_strided_slice %244 {offsets = [0, 0], sizes = [8, 32], strides = [1, 1]} : vector<8x96xf32> to vector<8x32xf32>
    %246 = vector.extract_strided_slice %244 {offsets = [0, 32], sizes = [8, 32], strides = [1, 1]} : vector<8x96xf32> to vector<8x32xf32>
    %247 = vector.extract_strided_slice %244 {offsets = [0, 64], sizes = [8, 32], strides = [1, 1]} : vector<8x96xf32> to vector<8x32xf32>
    %248 = vector.extract_strided_slice %238 {offsets = [0, 96], sizes = [8, 32], strides = [1, 1]} : vector<8x128xf32> to vector<8x32xf32>
    %249 = math.tanh %248 : vector<8x32xf32>
    %250 = arith.mulf %246, %236 : vector<8x32xf32>
    %251 = arith.mulf %245, %249 : vector<8x32xf32>
    %252 = arith.addf %250, %251 : vector<8x32xf32>
    %253 = math.tanh %252 : vector<8x32xf32>
    %254 = arith.mulf %247, %253 : vector<8x32xf32>
    %c7_i32 = arith.constant 7 : i32
    %255 = vector.broadcast %c7_i32 : i32 to vector<8x1xi32>
    %256 = arith.cmpi sgt, %23, %255 : vector<8x1xi32>
    %cst_39 = arith.constant 0.000000e+00 : f32
    %257 = vector.shape_cast %256 : vector<8x1xi1> to vector<8x1xi1>
    %258 = vector.broadcast %257 : vector<8x1xi1> to vector<8x32xi1>
    %259 = vector.broadcast %cst_39 : f32 to vector<8x32xf32>
    %260 = arith.select %258, %254, %259 : vector<8x32xi1>, vector<8x32xf32>
    %261 = tpu.concatenate %50, %80, %110, %140, %170, %200, %230, %260 in 0 : vector<8x32xf32>, vector<8x32xf32>, vector<8x32xf32>, vector<8x32xf32>, vector<8x32xf32>, vector<8x32xf32>, vector<8x32xf32>, vector<8x32xf32> -> vector<64x32xf32>
    %c0_40 = arith.constant 0 : index
    %c0_41 = arith.constant 0 : index
    %262 = vector.load %arg9[%c0_40, %c0_41] : memref<32x32xf32, #tpu.memory_space<vmem>>, vector<32x32xf32>
    %cst_42 = arith.constant dense<0.000000e+00> : vector<64x32xf32>
    %263 = tpu.matmul %261, %262, %cst_42 {dimension_numbers = #tpu.dot_dimension_numbers<[1], [0], [0], [1], [0, 0, 1, 1], [], []>} : vector<64x32xf32>, vector<32x32xf32>, vector<64x32xf32> -> vector<64x32xf32>
    %c0_43 = arith.constant 0 : index
    %c0_44 = arith.constant 0 : index
    %264 = vector.load %arg10[%c0_43, %c0_44] : memref<1x32xf32, #tpu.memory_space<vmem>>, vector<1x32xf32>
    %265 = vector.broadcast %264 : vector<1x32xf32> to vector<64x32xf32>
    %266 = arith.addf %263, %265 : vector<64x32xf32>
    %cst_45 = arith.constant dense<0xFF800000> : vector<64xf32>
    %267 = vector.multi_reduction <maximumf>, %266, %cst_45 [1] : vector<64x32xf32> to vector<64xf32>
    %268 = vector.shape_cast %267 : vector<64xf32> to vector<64x1xf32>
    %269 = vector.broadcast %268 : vector<64x1xf32> to vector<64x32xf32>
    %270 = arith.subf %266, %269 : vector<64x32xf32>
    %271 = math.exp %270 : vector<64x32xf32>
    %cst_46 = arith.constant dense<0.000000e+00> : vector<64xf32>
    %272 = vector.multi_reduction <add>, %271, %cst_46 [1] : vector<64x32xf32> to vector<64xf32>
    %273 = vector.shape_cast %272 : vector<64xf32> to vector<64x1xf32>
    %274 = math.log %273 : vector<64x1xf32>
    %275 = arith.addf %268, %274 : vector<64x1xf32>
    %c0_47 = arith.constant 0 : index
    %c0_48 = arith.constant 0 : index
    %276 = vector.load %arg2[%c0_47, %c0_48] : memref<64x1xi32, #tpu.memory_space<vmem>>, vector<64x1xi32>
    %277 = vector.broadcast %276 : vector<64x1xi32> to vector<64x32xi32>
    %278 = arith.cmpi eq, %0, %277 : vector<64x32xi32>
    %cst_49 = arith.constant 0.000000e+00 : f32
    %279 = vector.broadcast %cst_49 : f32 to vector<64x32xf32>
    %280 = arith.select %278, %266, %279 : vector<64x32xi1>, vector<64x32xf32>
    %cst_50 = arith.constant dense<0.000000e+00> : vector<64xf32>
    %281 = vector.multi_reduction <add>, %280, %cst_50 [1] : vector<64x32xf32> to vector<64xf32>
    %282 = vector.shape_cast %281 : vector<64xf32> to vector<64x1xf32>
    %283 = arith.subf %275, %282 : vector<64x1xf32>
    %c0_i32_51 = arith.constant 0 : i32
    %284 = vector.broadcast %c0_i32_51 : i32 to vector<64x1xi32>
    %285 = arith.cmpi ne, %276, %284 : vector<64x1xi32>
    %286 = arith.extui %285 : vector<64x1xi1> to vector<64x1xi32>
    %287 = arith.sitofp %286 : vector<64x1xi32> to vector<64x1xf32>
    %288 = vector.shape_cast %287 : vector<64x1xf32> to vector<1x64x1xf32>
    %cst_52 = arith.constant dense<0.000000e+00> : vector<1xf32>
    %289 = vector.multi_reduction <add>, %288, %cst_52 [1, 2] : vector<1x64x1xf32> to vector<1xf32>
    %290 = vector.shape_cast %289 : vector<1xf32> to vector<1x1x1xf32>
    %291 = vector.extract %290[0, 0, 0] : f32 from vector<1x1x1xf32>
    %cst_53 = arith.constant 1.000000e+00 : f32
    %292 = arith.maximumf %291, %cst_53 : f32
    %293 = arith.mulf %283, %287 : vector<64x1xf32>
    %294 = vector.shape_cast %293 : vector<64x1xf32> to vector<1x64x1xf32>
    %cst_54 = arith.constant dense<0.000000e+00> : vector<1xf32>
    %295 = vector.multi_reduction <add>, %294, %cst_54 [1, 2] : vector<1x64x1xf32> to vector<1xf32>
    %296 = vector.shape_cast %295 : vector<1xf32> to vector<1x1x1xf32>
    %297 = vector.extract %296[0, 0, 0] : f32 from vector<1x1x1xf32>
    %298 = arith.divf %297, %292 : f32
    %c0_55 = arith.constant 0 : index
    %c0_56 = arith.constant 0 : index
    %299 = memref.load %arg11[%c0_55, %c0_56] : memref<1x1xf32, #tpu.memory_space<smem>>
    memref.store %298, %arg11[%c0_55, %c0_56] : memref<1x1xf32, #tpu.memory_space<smem>>
    return
  }
  func.func @transform_0(%arg0: i32) -> (i32, i32) {
    %c0_i32 = arith.constant 0 : i32
    %c0_i32_0 = arith.constant 0 : i32
    %c0_i32_1 = arith.constant 0 : i32
    return %c0_i32, %c0_i32_0 : i32, i32
  }
  func.func @transform_1(%arg0: i32) -> (i32, i32) {
    %c0_i32 = arith.constant 0 : i32
    %c0_i32_0 = arith.constant 0 : i32
    %c0_i32_1 = arith.constant 0 : i32
    return %c0_i32, %c0_i32_0 : i32, i32
  }
  func.func @transform_2(%arg0: i32) -> (i32, i32) {
    %c0_i32 = arith.constant 0 : i32
    %c0_i32_0 = arith.constant 0 : i32
    %c0_i32_1 = arith.constant 0 : i32
    return %c0_i32, %c0_i32_0 : i32, i32
  }
  func.func @transform_3(%arg0: i32) -> (i32, i32) {
    %c0_i32 = arith.constant 0 : i32
    %c0_i32_0 = arith.constant 0 : i32
    %c0_i32_1 = arith.constant 0 : i32
    return %c0_i32, %c0_i32_0 : i32, i32
  }
  func.func @transform_4(%arg0: i32) -> (i32, i32) {
    %c0_i32 = arith.constant 0 : i32
    %c0_i32_0 = arith.constant 0 : i32
    %c0_i32_1 = arith.constant 0 : i32
    return %c0_i32, %c0_i32_0 : i32, i32
  }
  func.func @transform_5(%arg0: i32) -> (i32, i32) {
    %c0_i32 = arith.constant 0 : i32
    %c0_i32_0 = arith.constant 0 : i32
    %c0_i32_1 = arith.constant 0 : i32
    return %c0_i32, %c0_i32_0 : i32, i32
  }
  func.func @transform_6(%arg0: i32) -> (i32, i32) {
    %c0_i32 = arith.constant 0 : i32
    %c0_i32_0 = arith.constant 0 : i32
    %c0_i32_1 = arith.constant 0 : i32
    return %c0_i32, %c0_i32_0 : i32, i32
  }
  func.func @transform_7(%arg0: i32) -> (i32, i32) {
    %c0_i32 = arith.constant 0 : i32
    %c0_i32_0 = arith.constant 0 : i32
    %c0_i32_1 = arith.constant 0 : i32
    return %c0_i32, %c0_i32_0 : i32, i32
  }
  func.func @transform_8(%arg0: i32) -> (i32, i32) {
    %c0_i32 = arith.constant 0 : i32
    %c0_i32_0 = arith.constant 0 : i32
    %c0_i32_1 = arith.constant 0 : i32
    return %c0_i32, %c0_i32_0 : i32, i32
  }
  func.func @transform_9(%arg0: i32) -> (i32, i32) {
    %c0_i32 = arith.constant 0 : i32
    %c0_i32_0 = arith.constant 0 : i32
    %c0_i32_1 = arith.constant 0 : i32
    return %c0_i32, %c0_i32_0 : i32, i32
  }
  func.func @transform_10(%arg0: i32) -> (i32, i32) {
    %c0_i32 = arith.constant 0 : i32
    %c0_i32_0 = arith.constant 0 : i32
    %c0_i32_1 = arith.constant 0 : i32
    return %c0_i32, %c0_i32_0 : i32, i32
  }
}

</mosaic_0001>

<bundles_post_ra>
// kernel: reconstruction_loss.1
= control target key start
LH: loop header
LB: loop body
LE: loop exit
PB: predicated region body
PF: predicated region fallthrough
CT: control target
= control target key end

     0   :  { %v2058_v2 = vmov 0   ;;  %v2059_v6 = vmov 0.0|0.0   ;;  %s2675_s0 = inlined_call_operand.vmem [shape: s32[64,1], index: 0, kind: input, shape index: {}]   ;;  %s2676_s1 = inlined_call_operand.vmem [shape: s32[64,1], index: 1, kind: input, shape index: {}]   ;;  %s2677_s2 = inlined_call_operand.vmem [shape: s32[8,1], index: 2, kind: input, shape index: {}]   ;;  %s2678_s3 = inlined_call_operand.vmem [shape: f32[8,16], index: 3, kind: input, shape index: {}]   ;;  %s2679_s4 = inlined_call_operand.vmem [shape: f32[32,128], index: 4, kind: input, shape index: {}]   ;;  %s2680_s5 = inlined_call_operand.vmem [shape: f32[1,128], index: 5, kind: input, shape index: {}]   ;;  %s2681_s6 = inlined_call_operand.vmem [shape: f32[16,128], index: 6, kind: input, shape index: {}]   ;;  %s2682_s7 = inlined_call_operand.vmem [shape: f32[32,128], index: 7, kind: input, shape index: {}]   ;;  %s2683_s8 = inlined_call_operand.vmem [shape: f32[32,32], index: 8, kind: input, shape index: {}]   ;;  %s2684_s9 = inlined_call_operand.vmem [shape: f32[1,32], index: 9, kind: input, shape index: {}]   ;;  %s2685_s10 = inlined_call_operand.hbm [shape: f32[1,1], index: 10, kind: output, shape index: {}]  }
   0x1   :  { %v38_v0 = vld [vmem:[%s2675_s0] sm:$0xff]  ;;  %1946 = vset.pattern.permute.xlu0 %v2058_v2  ;;  %v39_v3 = vld [vmem:[%s2675_s0 + $0x8] sm:$0xff]  ;;  %1873 = vmatprep.subr.bf16.mxu1 %v2059_v6  ;;  %v96_v10 = vld [vmem:[%s2679_s4 + $0x10] sm:$0xff] }
   0x2   :  { %v2127_v1 = vld [vmem:[%s2677_s2] sm:$0xff]  ;;  %v95_v5 = vld [vmem:[%s2679_s4 + $0x8] sm:$0xff]  ;;  %47 = vperm.xlu0 %1946, %v38_v0   ;;  %v97_v11 = vld [vmem:[%s2679_s4 + $0x18] sm:$0xff]  ;;  %1947 = vset.pattern.permute.xlu1 %v2058_v2 }
   0x3   :  { %v94_v4 = vld [vmem:[%s2679_s4] sm:$0xff]  ;;  %v237_v9 = vld [vmem:[%s2681_s6 + $0x8] sm:$0xff]  ;;  %v1869_v13 = vpack.c.bf16 %v97_v11, %v96_v10 }
   0x4   :  { %v236_v7 = vld [vmem:[%s2681_s6] sm:$0xff]  ;;  %v1865_v8 = vpack.c.bf16 %v95_v5, %v94_v4  ;;  %v315_v15 = vld [vmem:[%s2682_s7 + $0x8] sm:$0xff] }
   0x5   :  { %v1874_v12 = vpack.c.bf16 %v237_v9, %v236_v7  ;;  %v314_v14 = vld [vmem:[%s2682_s7] sm:$0xff] }
   0x6   :  { %15 = vsyncpa [#allocation3], 0  ;;  %vm416_vm0 = vcmp.gt.s32.totalorder %v2127_v1, 0  ;;  %1866 = vmatprep.subr.bf16.mxu0 %v1865_v8  ;;  %vm2060_vm1 = vmmov 0   ;;  %v2061_v16 = vmov 0.0   ;;  %v235_v17 = vld [vmem:[%s2678_s3] sm:$0xff]  ;;  %v2165_v18 = vpack.c.bf16 %v315_v15, %v314_v14  ;;  %50 = vperm.xlu0 %1946, %v39_v3  }
   0x7   :  { %1754 = vmatprep.mubr.msk.f32.mxu1 %vm2060_vm1, %v2061_v16  ;;  %1868 = vmatpush3.bf16.msra.mxu0 %v1865_v8  ;;  %vm238_vm2 = vcmask 130048   ;;  %v316_v19 = vld [vmem:[%s2682_s7 + $0x10] sm:$0xff]  ;;  %v317_v20 = vld [vmem:[%s2682_s7 + $0x18] sm:$0xff]  ;;  %v417_v21 = vsel %vm416_vm0, 1, %v2058_v2  ;;  %v36_v23 = vlaneseq  ;;  %vm105_vm3 = vcmask 261120   ;;  %s2062_s18 = smov 32  }
   0x8   :  { %1875 = vmatpush3.bf16.msra.mxu1 %v1874_v12  ;;  %1870 = vmatprep.subr.bf16.mxu0 %v1869_v13  ;;  %v2176_v22 = vpack.c.bf16 %v317_v20, %v316_v19  ;;  %v2206_v33 = vld [vmem:[%s2680_s5] ss:$0 sm:$0xff]  ;;  %s2063_s5 = smov 64   ;;  %vm524_vm7 = vcmp.gt.s32.totalorder %v2127_v1, 1  ;;  %v40_v0 = vld [vmem:[%s2675_s0 + $0x10] sm:$0xff]  ;;  %v41_v15 = vld [vmem:[%s2675_s0 + $0x18] sm:$0xff] }
   0x9   :  { %1876 = vmatprep.subr.bf16.mxu1 %v2059_v6  ;;  %v2191_v24 = vand.u32 127, %v36_v23  ;;  %v525_v60 = vsel %vm524_vm7, 1, %v2058_v2  ;;  %vm633_vm11 = vcmp.gt.s32.totalorder %v2127_v1, 2  ;;  %vm742_vm13 = vcmp.gt.s32.totalorder %v2127_v1, 3  ;;  %s2064_s27 = smov 1.0   ;;  %s2046_s13 = scalar_lea.hbm %s2685_s10, 16 }
   0xa   :  { %419 = vperm.xlu0 %1946, %v417_v21   ;;  %vm960_vm7 = vcmp.gt.s32.totalorder %v2127_v1, 5  ;;  %p2047_p0 = scmp.ne.s32.totalorder %s2685_s10, %s2046_s13  ;;  %p2050_p1 = scmp.lt.u32.totalorder %s2046_s13, %s2685_s10 }
   0xb   :  { %1755 = vmatmul.mubr.msk.f32.vlgmr.msra.gmra.mrb[0].mxu1 %vm238_vm2, %v235_v17  ;;  %1872 = vmatpush3.bf16.msra.mxu0 %v1869_v13 }
   0xc   :  { %1878 = vmatpush3.bf16.msra.mxu1 %v2165_v18  ;;  %1765 = vmatprep.mubr.msk.f32.mxu1 %vm2060_vm1, %v2061_v16  ;;  %p2052_p2 = pnand %p2050_p1, %p2047_p0 }
   0xd   :  { %1879 = vmatprep.subr.bf16.mxu1 %v2059_v6  ;;  %1900 = vmatprep.subr.bf16.mxu0 %v2059_v6 }
  0x10   :  { %1881 = vmatpush3.bf16.msra.mxu1 %v2176_v22 }
  0x11   :  { %1882 = vmatprep.subr.bf16.mxu1 %v2059_v6 }
  0x13   :  { %1766 = vmatmul.mubr.f32.vlgmr.msra.gmra.mrb[2].mxu1 %v2061_v16 }
  0x14   :  { %1884 = vmatpush3.bf16.msra.mxu1 %v2165_v18  ;;  %1776 = vmatprep.mubr.msk.f32.mxu1 %vm2060_vm1, %v2061_v16 }
  0x15   :  { %1885 = vmatprep.subr.bf16.mxu1 %v2059_v6 }
  0x18   :  { %1887 = vmatpush3.bf16.msra.mxu1 %v2176_v22 }
  0x19   :  { %1888 = vmatprep.subr.bf16.mxu1 %v2059_v6 }
  0x81   :  { %v48_v25 = vpop.permute.xlu0 %47 }
  0x82   :  { %vm70_vm4 = vcmp.eq.s32.totalorder %v2191_v24, %v48_v25 }
  0x83   :  { %v1613_v26 = vsel %vm70_vm4, 1.0, %v2061_v16 }
  0x84   :  { %1738 = vmatprep.mubr.msk.f32.mxu0 %vm105_vm3, %v1613_v26 }
  0x85   :  { %v51_v27 = vpop.permute.xlu0 %50 }
  0x86   :  { %vm71_vm5 = vcmp.eq.s32.totalorder %v2191_v24, %v51_v27 }
  0x87   :  { %v1614_v28 = vsel %vm71_vm5, 1.0, %v2061_v16  ;;  %vm851_vm5 = vcmp.gt.s32.totalorder %v2127_v1, 4 }
  0x88   :  { %1739 = vmatmul.mubr.msk.f32.vlgmr.msra.gmra.mrb[0].mxu0 %vm105_vm3, %v1614_v28 }
  0x89   :  { %1902 = vmatpush3.bf16.msra.mxu0 %v2165_v18  ;;  %v420_v50 = vpop.permute.xlu0 %419 }
  0x8a   :  { %1903 = vmatprep.subr.bf16.mxu0 %v2059_v6  ;;  %vm421_vm6 = vcmp.eq.s32.totalorder %v420_v50, 1 }
  0x8d   :  { %1905 = vmatpush3.bf16.msra.mxu0 %v2176_v22 }
  0x8e   :  { %1912 = vmatprep.subr.bf16.mxu0 %v2059_v6 }
  0xde   :  { %v308_v29 = vpop.f32.mrb[0].mxu1 }
  0xdf   :  { %v1756_v30 = vpop.f32.mrb[1].mxu1 }
  0xe6   :  { %v387_v31 = vpop.f32.mrb[2].mxu1 }
  0xe7   :  { %v1767_v32 = vpop.f32.mrb[3].mxu1 }
 0x15b   :  { %v1740_v34 = vpop.f32.mrb[0].mxu0 }
 0x15c   :  { %v196_v35 = vpop.f32.mrb[1].mxu0  ;;  %v202_v55 = vadd.f32 %v1740_v34, %v2206_v33  ;;  %v634_v34 = vsel %vm633_vm11, 1, %v2058_v2  ;;  %vm1178_vm11 = vcmp.gt.s32.totalorder %v2127_v1, 7 }
 0x15d   :  { %v197_v36 = vadd.f32 %v2206_v33, %v196_v35 }
 0x15f   :  { %v312_v37 = vadd.f32 %v308_v29, %v197_v36 }
 0x161   :  { %v391_v38 = vadd.f32 %v387_v31, %v312_v37 }
 0x163   :  { %1948 = vtanh.f32 %v391_v38  ;;  %v1631_v40 = vmul.f32 -1.442695, %v391_v38 }
 0x165   :  { %1950 = vpow2.f32 %v1631_v40 }
 0x16d   :  { %v1949_v39 = vpop.eup %1948 }
 0x16e   :  { %401 = vrot.lane.b32.xlu1 %v1949_v39, %s2062_s18 }
 0x16f   :  { %v1951_v41 = vpop.eup %1950 }
 0x170   :  { %v395_v42 = vadd.f32 1.0, %v1951_v41 }
 0x172   :  { %1952 = vrcp.f32 %v395_v42 }
 0x17c   :  { %v1953_v43 = vpop.eup %1952 }
 0x17d   :  { %v399_v46 = vmul.f32 0.0, %v1953_v43 }
 0x1e0   :  { %v402_v44 = vpop.permute.xlu1 %401 }
 0x1e1   :  { %v404_v45 = vmul.f32 %v1953_v43, %v402_v44 }
 0x1e3   :  { %406 = vrot.lane.b32.xlu1 %v404_v45, %s2062_s18 }
 0x255   :  { %v407_v47 = vpop.permute.xlu1 %406 }
 0x256   :  { %v409_v48 = vadd.f32 %v407_v47, %v399_v46 }
 0x258   :  { %1954 = vtanh.f32 %v409_v48  ;;  %v423_v8 = vsel %vm421_vm6, %v409_v48, 0.0 }
 0x262   :  { %v1955_v49 = vpop.eup %1954 }
 0x263   :  { %412 = vrot.lane.b32.xlu1 %v1955_v49, %s2062_s18 }
 0x2d5   :  { %v413_v51 = vpop.permute.xlu1 %412 }
 0x2d6   :  { %v415_v52 = vmul.f32 %v1953_v43, %v413_v51 }
 0x2d8   :  { %v422_v53 = vsel %vm421_vm6, %v415_v52, 0.0 }
 0x2d9   :  { %425 = vrot.lane.b32.xlu0 %v422_v53, %s2063_s5 }
 0x34b   :  { %v2214_v54 = vpop.permute.xlu0 %425 }
 0x34c   :  { %1777 = vmatmul.mubr.msk.f32.vlgmr.msra.gmra.mrb[4].mxu1 %vm105_vm3, %v2214_v54 }
 0x34d   :  { %1890 = vmatpush3.bf16.msra.mxu1 %v2165_v18  ;;  %1787 = vmatprep.mubr.msk.f32.mxu1 %vm2060_vm1, %v2061_v16 }
 0x34e   :  { %1891 = vmatprep.subr.bf16.mxu1 %v2059_v6 }
 0x351   :  { %1893 = vmatpush3.bf16.msra.mxu1 %v2176_v22 }
 0x352   :  { %1894 = vmatprep.subr.bf16.mxu1 %v2059_v6 }
 0x41f   :  { %v495_v56 = vpop.f32.mrb[4].mxu1 }
 0x420   :  { %v499_v57 = vadd.f32 %v495_v56, %v202_v55  ;;  %v1778_v58 = vpop.f32.mrb[5].mxu1 }
 0x421   :  { %v42_v58 = vld [vmem:[%s2675_s0 + $0x20] sm:$0xff] }
 0x422   :  { %1956 = vtanh.f32 %v499_v57  ;;  %v1633_v61 = vmul.f32 -1.442695, %v499_v57  ;;  %v743_v57 = vsel %vm742_vm13, 1, %v2058_v2 }
 0x424   :  { %1958 = vpow2.f32 %v1633_v61 }
 0x42c   :  { %v1957_v59 = vpop.eup %1956 }
 0x42d   :  { %509 = vrot.lane.b32.xlu1 %v1957_v59, %s2062_s18  ;;  %v44_v59 = vld [vmem:[%s2675_s0 + $0x30] sm:$0xff] }
 0x42e   :  { %v1959_v62 = vpop.eup %1958 }
 0x42f   :  { %v503_v63 = vadd.f32 1.0, %v1959_v62 }
 0x431   :  { %527 = vperm.xlu1 %1947, %v525_v60   ;;  %1960 = vrcp.f32 %v503_v63 }
 0x435   :  { %53 = vperm.xlu1 %1947, %v40_v0  }
 0x43b   :  { %v1961_v3 = vpop.eup %1960 }
 0x43c   :  { %v507_v9 = vmul.f32 %v1961_v3, %v423_v8 }
 0x49f   :  { %v510_v4 = vpop.permute.xlu1 %509 }
 0x4a0   :  { %v512_v5 = vmul.f32 %v1961_v3, %v510_v4 }
 0x4a2   :  { %514 = vrot.lane.b32.xlu0 %v512_v5, %s2062_s18 }
 0x4b0   :  { %v2232_v7 = vpop.permute.xlu1 %527 }
 0x4b1   :  { %vm529_vm9 = vcmp.eq.s32.totalorder %v2232_v7, 1 }
 0x4b4   :  { %v54_v12 = vpop.permute.xlu1 %53 }
 0x4b5   :  { %vm72_vm8 = vcmp.eq.s32.totalorder %v2191_v24, %v54_v12 }
 0x4b6   :  { %v1615_v13 = vsel %vm72_vm8, 1.0, %v2061_v16  ;;  %vm1069_vm8 = vcmp.gt.s32.totalorder %v2127_v1, 6 }
 0x4b7   :  { %1741 = vmatprep.mubr.msk.f32.mxu0 %vm105_vm3, %v1615_v13 }
 0x514   :  { %v515_v10 = vpop.permute.xlu0 %514 }
 0x515   :  { %v517_v11 = vadd.f32 %v515_v10, %v507_v9 }
 0x517   :  { %1962 = vtanh.f32 %v517_v11  ;;  %v532_v41 = vsel %vm529_vm9, %v517_v11, %v423_v8 }
 0x521   :  { %v1963_v14 = vpop.eup %1962 }
 0x522   :  { %520 = vrot.lane.b32.xlu0 %v1963_v14, %s2062_s18  ;;  %v43_v14 = vld [vmem:[%s2675_s0 + $0x28] sm:$0xff] }
 0x526   :  { %56 = vperm.xlu0 %1946, %v41_v15   ;;  %v45_v15 = vld [vmem:[%s2675_s0 + $0x38] sm:$0xff] }
 0x594   :  { %v521_v17 = vpop.permute.xlu0 %520 }
 0x595   :  { %v2242_v19 = vmul.f32 %v1961_v3, %v521_v17 }
 0x597   :  { %v531_v20 = vsel %vm529_vm9, %v2242_v19, %v422_v53  ;;  %v530_v1 = vsel %vm529_vm9, %v2242_v19, 0.0 }
 0x598   :  { %534 = vrot.lane.b32.xlu1 %v531_v20, %s2063_s5 }
 0x5a5   :  { %v57_v21 = vpop.permute.xlu0 %56 }
 0x5a6   :  { %vm73_vm10 = vcmp.eq.s32.totalorder %v2191_v24, %v57_v21 }
 0x5a7   :  { %v1616_v23 = vsel %vm73_vm10, 1.0, %v2061_v16 }
 0x5a8   :  { %1742 = vmatmul.mubr.msk.f32.gmra.mrb[2].mxu0 %vm105_vm3, %v1616_v23 }
 0x60a   :  { %v535_v25 = vpop.permute.xlu1 %534 }
 0x60b   :  { %1788 = vmatmul.mubr.msk.f32.vlgmr.msra.gmra.mrb[6].mxu1 %vm105_vm3, %v535_v25 }
 0x60c   :  { %1896 = vmatpush3.bf16.msra.mxu1 %v2165_v18  ;;  %1798 = vmatprep.mubr.msk.f32.mxu1 %vm2060_vm1, %v2061_v16 }
 0x60d   :  { %1897 = vmatprep.subr.bf16.mxu1 %v2059_v6 }
 0x610   :  { %1899 = vmatpush3.bf16.msra.mxu1 %v2176_v22 }
 0x611   :  { %1906 = vmatprep.subr.bf16.mxu1 %v2059_v6 }
 0x67b   :  { %v1743_v26 = vpop.f32.mrb[2].mxu0 }
 0x67c   :  { %v206_v27 = vpop.f32.mrb[3].mxu0  ;;  %v212_v51 = vadd.f32 %v1743_v26, %v2206_v33 }
 0x67d   :  { %v207_v28 = vadd.f32 %v2206_v33, %v206_v27 }
 0x6de   :  { %v604_v29 = vpop.f32.mrb[6].mxu1 }
 0x6df   :  { %v608_v30 = vadd.f32 %v604_v29, %v207_v28  ;;  %v1789_v31 = vpop.f32.mrb[7].mxu1 }
 0x6e1   :  { %1964 = vtanh.f32 %v608_v30  ;;  %v1635_v35 = vmul.f32 -1.442695, %v608_v30 }
 0x6e3   :  { %1966 = vpow2.f32 %v1635_v35 }
 0x6eb   :  { %v1965_v32 = vpop.eup %1964 }
 0x6ec   :  { %618 = vrot.lane.b32.xlu0 %v1965_v32, %s2062_s18 }
 0x6ed   :  { %v1967_v36 = vpop.eup %1966 }
 0x6ee   :  { %v612_v37 = vadd.f32 1.0, %v1967_v36 }
 0x6f0   :  { %636 = vperm.xlu0 %1946, %v634_v34   ;;  %1968 = vrcp.f32 %v612_v37 }
 0x6fa   :  { %v1969_v38 = vpop.eup %1968 }
 0x6fb   :  { %v616_v42 = vmul.f32 %v1969_v38, %v532_v41 }
 0x75e   :  { %v619_v39 = vpop.permute.xlu0 %618 }
 0x75f   :  { %v621_v40 = vmul.f32 %v1969_v38, %v619_v39 }
 0x761   :  { %623 = vrot.lane.b32.xlu1 %v621_v40, %s2062_s18 }
 0x76f   :  { %v2267_v46 = vpop.permute.xlu0 %636 }
 0x770   :  { %vm638_vm12 = vcmp.eq.s32.totalorder %v2267_v46, 1 }
 0x7d3   :  { %v624_v43 = vpop.permute.xlu1 %623 }
 0x7d4   :  { %v626_v44 = vadd.f32 %v624_v43, %v616_v42 }
 0x7d6   :  { %1970 = vtanh.f32 %v626_v44  ;;  %v641_v9 = vsel %vm638_vm12, %v626_v44, %v532_v41  ;;  %v852_v41 = vsel %vm851_vm5, 1, %v2058_v2 }
 0x7e0   :  { %v1971_v45 = vpop.eup %1970 }
 0x7e1   :  { %629 = vrot.lane.b32.xlu1 %v1971_v45, %s2062_s18 }
 0x853   :  { %v630_v47 = vpop.permute.xlu1 %629 }
 0x854   :  { %v2269_v48 = vmul.f32 %v1969_v38, %v630_v47 }
 0x856   :  { %v640_v49 = vsel %vm638_vm12, %v2269_v48, %v531_v20 }
 0x857   :  { %643 = vrot.lane.b32.xlu0 %v640_v49, %s2063_s5 }
 0x8c9   :  { %v644_v50 = vpop.permute.xlu0 %643 }
 0x8ca   :  { %1799 = vmatmul.mubr.msk.f32.vlgmr.msra.gmra.mrb[8].mxu1 %vm105_vm3, %v644_v50 }
 0x8cb   :  { %1908 = vmatpush3.bf16.msra.mxu1 %v2165_v18  ;;  %1820 = vmatprep.mubr.msk.f32.mxu1 %vm2060_vm1, %v2061_v16 }
 0x8cc   :  { %1909 = vmatprep.subr.bf16.mxu1 %v2059_v6 }
 0x8cf   :  { %1911 = vmatpush3.bf16.msra.mxu1 %v2176_v22 }
 0x8d0   :  { %1918 = vmatprep.subr.bf16.mxu1 %v2059_v6 }
 0x99d   :  { %v713_v52 = vpop.f32.mrb[8].mxu1 }
 0x99e   :  { %v717_v53 = vadd.f32 %v713_v52, %v212_v51  ;;  %v1800_v55 = vpop.f32.mrb[9].mxu1 }
 0x9a0   :  { %1972 = vtanh.f32 %v717_v53  ;;  %v1637_v60 = vmul.f32 -1.442695, %v717_v53 }
 0x9a2   :  { %1974 = vpow2.f32 %v1637_v60 }
 0x9aa   :  { %v1973_v56 = vpop.eup %1972 }
 0x9ab   :  { %727 = vrot.lane.b32.xlu1 %v1973_v56, %s2062_s18 }
 0x9ac   :  { %v1975_v61 = vpop.eup %1974 }
 0x9ad   :  { %v721_v62 = vadd.f32 1.0, %v1975_v61 }
 0x9af   :  { %745 = vperm.xlu1 %1947, %v743_v57   ;;  %1976 = vrcp.f32 %v721_v62 }
 0x9b3   :  { %59 = vperm.xlu1 %1947, %v42_v58  }
 0x9b7   :  { %65 = vperm.xlu1 %1947, %v44_v59  }
 0x9b9   :  { %v1977_v63 = vpop.eup %1976 }
 0x9ba   :  { %v725_v10 = vmul.f32 %v1977_v63, %v641_v9 }
 0xa1d   :  { %v728_v0 = vpop.permute.xlu1 %727 }
 0xa1e   :  { %v730_v3 = vmul.f32 %v1977_v63, %v728_v0 }
 0xa20   :  { %732 = vrot.lane.b32.xlu0 %v730_v3, %s2062_s18 }
 0xa2e   :  { %v2294_v4 = vpop.permute.xlu1 %745 }
 0xa2f   :  { %vm747_vm15 = vcmp.eq.s32.totalorder %v2294_v4, 1 }
 0xa32   :  { %v60_v5 = vpop.permute.xlu1 %59 }
 0xa33   :  { %vm74_vm14 = vcmp.eq.s32.totalorder %v2191_v24, %v60_v5 }
 0xa34   :  { %v1617_v8 = vsel %vm74_vm14, 1.0, %v2061_v16  ;;  %vm1536_vm14 = vcmask 7168  }
 0xa35   :  { %1744 = vmatprep.mubr.msk.f32.mxu0 %vm105_vm3, %v1617_v8 }
 0xa36   :  { %v66_v23 = vpop.permute.xlu1 %65 }
 0xa37   :  { %vm76_vm0 = vcmp.eq.s32.totalorder %v2191_v24, %v66_v23 }
 0xa38   :  { %v1619_v27 = vsel %vm76_vm0, 1.0, %v2061_v16 }
 0xa92   :  { %v733_v11 = vpop.permute.xlu0 %732 }
 0xa93   :  { %v735_v12 = vadd.f32 %v733_v11, %v725_v10 }
 0xa95   :  { %1978 = vtanh.f32 %v735_v12  ;;  %v750_v50 = vsel %vm747_vm15, %v735_v12, %v641_v9 }
 0xa9f   :  { %v1979_v13 = vpop.eup %1978 }
 0xaa0   :  { %738 = vrot.lane.b32.xlu0 %v1979_v13, %s2062_s18 }
 0xaa4   :  { %62 = vperm.xlu0 %1946, %v43_v14  }
 0xaa8   :  { %68 = vperm.xlu0 %1946, %v45_v15  }
 0xb12   :  { %v739_v17 = vpop.permute.xlu0 %738 }
 0xb13   :  { %v2308_v20 = vmul.f32 %v1977_v63, %v739_v17 }
 0xb15   :  { %v749_v21 = vsel %vm747_vm15, %v2308_v20, %v640_v49 }
 0xb16   :  { %752 = vrot.lane.b32.xlu1 %v749_v21, %s2063_s5 }
 0xb23   :  { %v63_v25 = vpop.permute.xlu0 %62 }
 0xb24   :  { %vm75_vm2 = vcmp.eq.s32.totalorder %v2191_v24, %v63_v25 }
 0xb25   :  { %v1618_v26 = vsel %vm75_vm2, 1.0, %v2061_v16 }
 0xb26   :  { %1745 = vmatmul.mubr.msk.f32.gmra.mrb[4].mxu0 %vm105_vm3, %v1618_v26 }
 0xb27   :  { %1747 = vmatprep.mubr.msk.f32.mxu0 %vm105_vm3, %v1619_v27  ;;  %v69_v28 = vpop.permute.xlu0 %68 }
 0xb28   :  { %vm77_vm4 = vcmp.eq.s32.totalorder %v2191_v24, %v69_v28 }
 0xb29   :  { %v1620_v29 = vsel %vm77_vm4, 1.0, %v2061_v16 }
 0xb2a   :  { %1748 = vmatmul.mubr.msk.f32.gmra.mrb[6].mxu0 %vm105_vm3, %v1620_v29 }
 0xb2b   :  { %1809 = vmatprep.mubr.msk.f32.mxu0 %vm2060_vm1, %v2061_v16 }
 0xb88   :  { %v753_v30 = vpop.permute.xlu1 %752 }
 0xb89   :  { %1810 = vmatmul.mubr.msk.f32.vlgmr.msra.gmra.mrb[8].mxu0 %vm105_vm3, %v753_v30 }
 0xb8a   :  { %1914 = vmatpush3.bf16.msra.mxu0 %v2165_v18  ;;  %1831 = vmatprep.mubr.msk.f32.mxu0 %vm2060_vm1, %v2061_v16 }
 0xb8b   :  { %1915 = vmatprep.subr.bf16.mxu0 %v2059_v6 }
 0xb8e   :  { %1917 = vmatpush3.bf16.msra.mxu0 %v2176_v22 }
 0xbf9   :  { %v1746_v31 = vpop.f32.mrb[4].mxu0 }
 0xbfa   :  { %v216_v32 = vpop.f32.mrb[5].mxu0  ;;  %v222_v61 = vadd.f32 %v1746_v31, %v2206_v33 }
 0xbfb   :  { %v217_v36 = vadd.f32 %v2206_v33, %v216_v32  ;;  %v1070_v32 = vsel %vm1069_vm8, 1, %v2058_v2 }
 0xbfd   :  { %v2332_v34 = vpop.f32.mrb[6].mxu0 }
 0xbfe   :  { %v2334_v35 = vpop.f32.mrb[7].mxu0 }
 0xbff   :  { %v227_v27 = vadd.f32 %v2206_v33, %v2334_v35 }
 0xc5c   :  { %v822_v37 = vpop.f32.mrb[8].mxu0 }
 0xc5d   :  { %v826_v38 = vadd.f32 %v822_v37, %v217_v36  ;;  %v1811_v39 = vpop.f32.mrb[9].mxu0 }
 0xc5f   :  { %1980 = vtanh.f32 %v826_v38  ;;  %v1639_v42 = vmul.f32 -1.442695, %v826_v38 }
 0xc61   :  { %1982 = vpow2.f32 %v1639_v42 }
 0xc69   :  { %v1981_v40 = vpop.eup %1980 }
 0xc6a   :  { %836 = vrot.lane.b32.xlu0 %v1981_v40, %s2062_s18 }
 0xc6b   :  { %v1983_v43 = vpop.eup %1982 }
 0xc6c   :  { %v830_v44 = vadd.f32 1.0, %v1983_v43 }
 0xc6e   :  { %854 = vperm.xlu0 %1946, %v852_v41   ;;  %1984 = vrcp.f32 %v830_v44 }
 0xc78   :  { %v1985_v45 = vpop.eup %1984 }
 0xc79   :  { %v834_v51 = vmul.f32 %v1985_v45, %v750_v50 }
 0xcdc   :  { %v837_v47 = vpop.permute.xlu0 %836 }
 0xcdd   :  { %v839_v49 = vmul.f32 %v1985_v45, %v837_v47 }
 0xcdf   :  { %841 = vrot.lane.b32.xlu1 %v839_v49, %s2062_s18 }
 0xced   :  { %v2344_v56 = vpop.permute.xlu0 %854 }
 0xcee   :  { %vm856_vm6 = vcmp.eq.s32.totalorder %v2344_v56, 1 }
 0xd51   :  { %v842_v52 = vpop.permute.xlu1 %841 }
 0xd52   :  { %v844_v53 = vadd.f32 %v842_v52, %v834_v51  ;;  %v232_v52 = vadd.f32 %v2332_v34, %v2206_v33  ;;  %v1179_v33 = vsel %vm1178_vm11, 1, %v2058_v2  ;;  %v1187_v34 = vld [vmem:[%s2683_s8 + $0x10] sm:$0xff] }
 0xd54   :  { %1986 = vtanh.f32 %v844_v53  ;;  %v859_v11 = vsel %vm856_vm6, %v844_v53, %v750_v50 }
 0xd5e   :  { %v1987_v55 = vpop.eup %1986 }
 0xd5f   :  { %847 = vrot.lane.b32.xlu1 %v1987_v55, %s2062_s18 }
 0xdd1   :  { %v848_v57 = vpop.permute.xlu1 %847 }
 0xdd2   :  { %v2346_v58 = vmul.f32 %v1985_v45, %v848_v57 }
 0xdd4   :  { %v858_v59 = vsel %vm856_vm6, %v2346_v58, %v749_v21 }
 0xdd5   :  { %861 = vrot.lane.b32.xlu0 %v858_v59, %s2063_s5 }
 0xe47   :  { %v862_v60 = vpop.permute.xlu0 %861 }
 0xe48   :  { %1821 = vmatmul.mubr.msk.f32.vlgmr.msra.gmra.mrb[10].mxu1 %vm105_vm3, %v862_v60  ;;  %v1186_v60 = vld [vmem:[%s2683_s8 + $0x8] sm:$0xff] }
 0xe49   :  { %1920 = vmatpush3.bf16.msra.mxu1 %v2165_v18  ;;  %1842 = vmatprep.mubr.msk.f32.mxu1 %vm2060_vm1, %v2061_v16  ;;  %v961_v18 = vsel %vm960_vm7, 1, %v2058_v2  ;;  %v748_v2 = vsel %vm747_vm15, %v2308_v20, 0.0 }
 0xe4a   :  { %1921 = vmatprep.subr.bf16.mxu1 %v2059_v6 }
 0xe4d   :  { %1923 = vmatpush3.bf16.msra.mxu1 %v2176_v22 }
 0xf1b   :  { %v931_v62 = vpop.f32.mrb[10].mxu1 }
 0xf1c   :  { %v935_v63 = vadd.f32 %v931_v62, %v222_v61  ;;  %v1822_v0 = vpop.f32.mrb[11].mxu1 }
 0xf1e   :  { %1988 = vtanh.f32 %v935_v63  ;;  %v1641_v5 = vmul.f32 -1.442695, %v935_v63  ;;  %v1188_v63 = vld [vmem:[%s2683_s8 + $0x18] sm:$0xff] }
 0xf1f   :  { %v1928_v0 = vpack.c.bf16 %v1188_v63, %v1187_v34  ;;  %v2515_v34 = vld [vmem:[%s2676_s1 + $0x30] sm:$0xff]  ;;  %v2520_v63 = vld [vmem:[%s2676_s1 + $0x38] sm:$0xff] }
 0xf20   :  { %1990 = vpow2.f32 %v1641_v5  ;;  %vm1518_vm8 = vcmp.ne.s32.totalorder %v2515_v34, 0 }
 0xf28   :  { %v1989_v3 = vpop.eup %1988 }
 0xf29   :  { %945 = vrot.lane.b32.xlu1 %v1989_v3, %s2062_s18 }
 0xf2a   :  { %v1991_v8 = vpop.eup %1990 }
 0xf2b   :  { %v939_v6 = vadd.f32 1.0, %v1991_v8 }
 0xf2d   :  { %963 = vperm.xlu1 %1947, %v961_v18   ;;  %1992 = vrcp.f32 %v939_v6 }
 0xf37   :  { %v1993_v22 = vpop.eup %1992 }
 0xf38   :  { %v943_v12 = vmul.f32 %v1993_v22, %v859_v11 }
 0xf9b   :  { %v946_v9 = vpop.permute.xlu1 %945 }
 0xf9c   :  { %v948_v10 = vmul.f32 %v1993_v22, %v946_v9 }
 0xf9e   :  { %950 = vrot.lane.b32.xlu0 %v948_v10, %s2062_s18 }
 0xfac   :  { %v2367_v17 = vpop.permute.xlu1 %963 }
 0xfad   :  { %vm965_vm1 = vcmp.eq.s32.totalorder %v2367_v17, 1  ;;  %v1646_v17 = vld [vmem:[%s2684_s9] ss:$0 sm:$0xff] }
0x1010   :  { %v951_v13 = vpop.permute.xlu0 %950 }
0x1011   :  { %v953_v14 = vadd.f32 %v951_v13, %v943_v12  ;;  %v639_v13 = vsel %vm638_vm12, %v2269_v48, 0.0 }
0x1013   :  { %1994 = vtanh.f32 %v953_v14  ;;  %v968_v40 = vsel %vm965_vm1, %v953_v14, %v859_v11  ;;  %v857_v14 = vsel %vm856_vm6, %v2346_v58, 0.0 }
0x101d   :  { %v1995_v15 = vpop.eup %1994 }
0x101e   :  { %956 = vrot.lane.b32.xlu0 %v1995_v15, %s2062_s18 }
0x1090   :  { %v957_v21 = vpop.permute.xlu0 %956 }
0x1091   :  { %v2369_v23 = vmul.f32 %v1993_v22, %v957_v21 }
0x1093   :  { %v967_v25 = vsel %vm965_vm1, %v2369_v23, %v858_v59  ;;  %v1185_v59 = vld [vmem:[%s2683_s8] sm:$0xff]  ;;  %v966_v3 = vsel %vm965_vm1, %v2369_v23, 0.0 }
0x1094   :  { %970 = vrot.lane.b32.xlu1 %v967_v25, %s2063_s5  ;;  %v1924_v61 = vpack.c.bf16 %v1186_v60, %v1185_v59 }
0x1096   :  { %1925 = vmatprep.subr.bf16.mxu0 %v1924_v61 }
0x1106   :  { %v971_v26 = vpop.permute.xlu1 %970 }
0x1107   :  { %1832 = vmatmul.mubr.msk.f32.vlgmr.msra.gmra.mrb[10].mxu0 %vm105_vm3, %v971_v26 }
0x1108   :  { %1853 = vmatprep.mubr.msk.f32.mxu0 %vm105_vm3, %v2214_v54  ;;  %1927 = vmatpush3.bf16.msra.mxu0 %v1924_v61 }
0x1109   :  { %1929 = vmatprep.subr.bf16.mxu0 %v1928_v0 }
0x110c   :  { %1931 = vmatpush3.bf16.msra.mxu0 %v1928_v0 }
0x11da   :  { %v1040_v28 = vpop.f32.mrb[10].mxu0 }
0x11db   :  { %v1044_v29 = vadd.f32 %v1040_v28, %v227_v27  ;;  %v1833_v30 = vpop.f32.mrb[11].mxu0 }
0x11dd   :  { %1996 = vtanh.f32 %v1044_v29  ;;  %v1643_v36 = vmul.f32 -1.442695, %v1044_v29 }
0x11df   :  { %1998 = vpow2.f32 %v1643_v36 }
0x11e7   :  { %v1997_v31 = vpop.eup %1996 }
0x11e8   :  { %1054 = vrot.lane.b32.xlu0 %v1997_v31, %s2062_s18 }
0x11e9   :  { %v1999_v37 = vpop.eup %1998 }
0x11ea   :  { %v1048_v38 = vadd.f32 1.0, %v1999_v37 }
0x11ec   :  { %1072 = vperm.xlu0 %1946, %v1070_v32   ;;  %2000 = vrcp.f32 %v1048_v38 }
0x11f6   :  { %v2001_v54 = vpop.eup %2000 }
0x11f7   :  { %v1052_v41 = vmul.f32 %v2001_v54, %v968_v40 }
0x125a   :  { %v1055_v39 = vpop.permute.xlu0 %1054 }
0x125b   :  { %v1057_v35 = vmul.f32 %v2001_v54, %v1055_v39 }
0x125d   :  { %1059 = vrot.lane.b32.xlu1 %v1057_v35, %s2062_s18 }
0x126b   :  { %v1073_v45 = vpop.permute.xlu0 %1072 }
0x126c   :  { %vm1074_vm10 = vcmp.eq.s32.totalorder %v1073_v45, 1 }
0x12cf   :  { %v1060_v42 = vpop.permute.xlu1 %1059 }
0x12d0   :  { %v1062_v43 = vadd.f32 %v1060_v42, %v1052_v41 }
0x12d2   :  { %2002 = vtanh.f32 %v1062_v43  ;;  %v1077_v22 = vsel %vm1074_vm10, %v1062_v43, %v968_v40 }
0x12dc   :  { %v2003_v44 = vpop.eup %2002 }
0x12dd   :  { %1065 = vrot.lane.b32.xlu1 %v2003_v44, %s2062_s18 }
0x134f   :  { %v1066_v47 = vpop.permute.xlu1 %1065 }
0x1350   :  { %v1068_v49 = vmul.f32 %v2001_v54, %v1066_v47 }
0x1352   :  { %v1076_v50 = vsel %vm1074_vm10, %v1068_v49, %v967_v25  ;;  %v1075_v15 = vsel %vm1074_vm10, %v1068_v49, 0.0  ;;  %v2471_v49 = vld [vmem:[%s2676_s1] sm:$0xff] }
0x1353   :  { %1079 = vrot.lane.b32.xlu0 %v1076_v50, %s2063_s5  ;;  %v2477_v50 = vld [vmem:[%s2676_s1 + $0x10] sm:$0xff]  ;;  %vm1512_vm12 = vcmp.ne.s32.totalorder %v2471_v49, 0 }
0x1354   :  { %vm1514_vm15 = vcmp.ne.s32.totalorder %v2477_v50, 0 }
0x13c5   :  { %v1080_v51 = vpop.permute.xlu0 %1079 }
0x13c6   :  { %1843 = vmatmul.mubr.msk.f32.vlgmr.msra.gmra.mrb[12].mxu1 %vm105_vm3, %v1080_v51  ;;  %v2483_v51 = vld [vmem:[%s2676_s1 + $0x18] sm:$0xff] }
0x13c7   :  { %vm1515_vm0 = vcmp.ne.s32.totalorder %v2483_v51, 0 }
0x1499   :  { %v1149_v53 = vpop.f32.mrb[12].mxu1 }
0x149a   :  { %v1153_v55 = vadd.f32 %v1149_v53, %v232_v52  ;;  %v1844_v57 = vpop.f32.mrb[13].mxu1  ;;  %v2488_v52 = vld [vmem:[%s2676_s1 + $0x8] sm:$0xff]  ;;  %v2495_v53 = vld [vmem:[%s2676_s1 + $0x20] sm:$0xff] }
0x149b   :  { %vm1513_vm13 = vcmp.ne.s32.totalorder %v2488_v52, 0  ;;  %vm1516_vm2 = vcmp.ne.s32.totalorder %v2495_v53, 0 }
0x149c   :  { %2004 = vtanh.f32 %v1153_v55  ;;  %v1645_v18 = vmul.f32 -1.442695, %v1153_v55 }
0x149e   :  { %2006 = vpow2.f32 %v1645_v18 }
0x14a6   :  { %v2005_v62 = vpop.eup %2004 }
0x14a7   :  { %1163 = vrot.lane.b32.xlu1 %v2005_v62, %s2062_s18 }
0x14a8   :  { %v2007_v5 = vpop.eup %2006 }
0x14a9   :  { %v1157_v8 = vadd.f32 1.0, %v2007_v5 }
0x14ab   :  { %1181 = vperm.xlu1 %1947, %v1179_v33   ;;  %2008 = vrcp.f32 %v1157_v8  ;;  %v2509_v33 = vld [vmem:[%s2676_s1 + $0x28] sm:$0xff] }
0x14ac   :  { %vm1517_vm6 = vcmp.ne.s32.totalorder %v2509_v33, 0 }
0x14af   :  { %1203 = vrot.lane.b32.xlu1 %v530_v1, %s2063_s5 }
0x14b3   :  { %1207 = vrot.lane.b32.xlu1 %v748_v2, %s2063_s5 }
0x14b5   :  { %v2009_v7 = vpop.eup %2008 }
0x14b6   :  { %v1161_v9 = vmul.f32 %v2009_v7, %v1077_v22 }
0x14b7   :  { %1211 = vrot.lane.b32.xlu1 %v966_v3, %s2063_s5 }
0x1519   :  { %v1164_v19 = vpop.permute.xlu1 %1163 }
0x151a   :  { %v1166_v6 = vmul.f32 %v2009_v7, %v1164_v19 }
0x151c   :  { %1168 = vrot.lane.b32.xlu0 %v1166_v6, %s2062_s18 }
0x152a   :  { %v1182_v4 = vpop.permute.xlu1 %1181 }
0x152b   :  { %vm1183_vm9 = vcmp.eq.s32.totalorder %v1182_v4, 1 }
0x152e   :  { %v1204_v20 = vpop.permute.xlu1 %1203 }
0x152f   :  { %1854 = vmatmul.mubr.msk.f32.vlgmr.msra.gmra.mrb[12].mxu0 %vm105_vm3, %v1204_v20 }
0x1532   :  { %v1208_v25 = vpop.permute.xlu1 %1207 }
0x1536   :  { %v1212_v29 = vpop.permute.xlu1 %1211 }
0x158e   :  { %v1169_v10 = vpop.permute.xlu0 %1168 }
0x158f   :  { %v1171_v11 = vadd.f32 %v1169_v10, %v1161_v9 }
0x1591   :  { %2010 = vtanh.f32 %v1171_v11 }
0x159b   :  { %v2011_v12 = vpop.eup %2010 }
0x159c   :  { %1174 = vrot.lane.b32.xlu0 %v2011_v12, %s2062_s18 }
0x15a0   :  { %1205 = vrot.lane.b32.xlu0 %v639_v13, %s2063_s5 }
0x15a4   :  { %1209 = vrot.lane.b32.xlu0 %v857_v14, %s2063_s5 }
0x15a8   :  { %1213 = vrot.lane.b32.xlu0 %v1075_v15, %s2063_s5 }
0x1602   :  { %v1855_v21 = vpop.f32.mrb[12].mxu0 }
0x1603   :  { %v1297_v23 = vpop.f32.mrb[13].mxu0  ;;  %v2447_v31 = vadd.f32 %v1855_v21, %v1646_v17 }
0x1604   :  { %v2437_v46 = vadd.f32 %v1646_v17, %v1297_v23 }
0x1605   :  { %v1339_v32 = vsel %vm105_vm3, %v2447_v31, -inf }
0x1606   :  { %v1336_v48 = vsel %vm105_vm3, %v2437_v46, -inf }
0x1607   :  { %1337 = vmax.xlane.f32.xlu0 %v1336_v48 }
0x160e   :  { %v1175_v56 = vpop.permute.xlu0 %1174 }
0x160f   :  { %v1177_v58 = vmul.f32 %v2009_v7, %v1175_v56 }
0x1611   :  { %v1184_v26 = vsel %vm1183_vm9, %v1177_v58, 0.0  ;;  %vm1519_vm9 = vcmp.ne.s32.totalorder %v2520_v63, 0 }
0x1612   :  { %1215 = vrot.lane.b32.xlu1 %v1184_v26, %s2063_s5  ;;  %v1206_v27 = vpop.permute.xlu0 %1205 }
0x1613   :  { %1856 = vmatprep.mubr.msk.f32.mxu0 %vm105_vm3, %v1206_v27 }
0x1614   :  { %1857 = vmatmul.mubr.msk.f32.gmra.mrb[14].mxu0 %vm105_vm3, %v1208_v25 }
0x1616   :  { %v1210_v28 = vpop.permute.xlu0 %1209 }
0x1617   :  { %1859 = vmatprep.mubr.msk.f32.mxu0 %vm105_vm3, %v1210_v28 }
0x1618   :  { %1860 = vmatmul.mubr.msk.f32.gmra.mrb[16].mxu0 %vm105_vm3, %v1212_v29 }
0x161a   :  { %v1214_v30 = vpop.permute.xlu0 %1213 }
0x161b   :  { %1862 = vmatprep.mubr.msk.f32.mxu0 %vm105_vm3, %v1214_v30 }
0x1636   :  { %1340 = vmax.xlane.f32.xlu1 %v1339_v32 }
0x1684   :  { %v1216_v36 = vpop.permute.xlu1 %1215 }
0x1685   :  { %1863 = vmatmul.mubr.msk.f32.gmra.mrb[18].mxu0 %vm105_vm3, %v1216_v36 }
0x1694   :  { %v2524_v0 = vpop.xlane.xlu0 %1337 }
0x1695   :  { %v1360_v2 = vsub.f32 %v2437_v46, %v2524_v0 }
0x1697   :  { %v1368_v5 = vmul.f32 1.442695, %v1360_v2  ;;  %v2584_v2 = vsel %vm1515_vm0, 1.0, %v2061_v16 }
0x1699   :  { %2012 = vpow2.f32 %v1368_v5 }
0x16a3   :  { %v2013_v14 = vpop.eup %2012 }
0x16a4   :  { %v1384_v15 = vsel %vm105_vm3, %v2013_v14, 0.0 }
0x16c3   :  { %v2530_v3 = vpop.xlane.xlu1 %1340 }
0x16c4   :  { %v1361_v7 = vsub.f32 %v2447_v31, %v2530_v3 }
0x16c6   :  { %v1370_v20 = vmul.f32 1.442695, %v1361_v7 }
0x16e7   :  { %v1858_v37 = vpop.f32.mrb[14].mxu0 }
0x16e8   :  { %v1307_v38 = vpop.f32.mrb[15].mxu0  ;;  %v2454_v39 = vadd.f32 %v1858_v37, %v1646_v17 }
0x16e9   :  { %v2452_v54 = vadd.f32 %v1646_v17, %v1307_v38 }
0x16ea   :  { %v1345_v44 = vsel %vm105_vm3, %v2454_v39, -inf }
0x16eb   :  { %v1861_v35 = vpop.f32.mrb[16].mxu0  ;;  %v1342_v40 = vsel %vm105_vm3, %v2452_v54, -inf }
0x16ec   :  { %1343 = vmax.xlane.f32.xlu0 %v1342_v40  ;;  %v1317_v41 = vpop.f32.mrb[17].mxu0  ;;  %v2460_v43 = vadd.f32 %v1861_v35, %v1646_v17 }
0x16ed   :  { %v2458_v42 = vadd.f32 %v1646_v17, %v1317_v41 }
0x16ee   :  { %v1351_v47 = vsel %vm105_vm3, %v2460_v43, -inf }
0x16ef   :  { %v1348_v45 = vsel %vm105_vm3, %v2458_v42, -inf }
0x16f0   :  { %1346 = vmax.xlane.f32.xlu0 %v1345_v44  ;;  %1349 = vmax.xlane.f32.xlu1 %v1348_v45  ;;  %v2567_v45 = vsel %vm1512_vm12, 1.0, %v2061_v16 }
0x16f4   :  { %1352 = vmax.xlane.f32.xlu0 %v1351_v47  ;;  %v2570_v47 = vsel %vm1513_vm13, 1.0, %v2061_v16 }
0x1701   :  { %1441 = vperm.xlu1 %1947, %v2471_v49   ;;  %v1537_v49 = vsel %vm1536_vm14, %v2567_v45, 0.0 }
0x1705   :  { %1447 = vperm.xlu1 %1947, %v2477_v50  }
0x1709   :  { %1450 = vperm.xlu1 %1947, %v2483_v51   ;;  %v2592_v51 = vsel %vm1516_vm2, 1.0, %v2061_v16 }
0x170a   :  { %1444 = vperm.xlu0 %1946, %v2488_v52   ;;  %v1538_v52 = vsel %vm1536_vm14, %v2570_v47, 0.0 }
0x170e   :  { %1453 = vperm.xlu0 %1946, %v2495_v53  }
0x1758   :  { %v1864_v55 = vpop.f32.mrb[18].mxu0 }
0x1759   :  { %v2498_v57 = vadd.f32 %v1864_v55, %v1646_v17  ;;  %v1327_v59 = vpop.f32.mrb[19].mxu0 }
0x175a   :  { %v2500_v60 = vadd.f32 %v1646_v17, %v1327_v59  ;;  %v2578_v59 = vsel %vm1514_vm15, 1.0, %v2061_v16 }
0x175b   :  { %v1357_v61 = vsel %vm105_vm3, %v2498_v57, -inf }
0x175c   :  { %1358 = vmax.xlane.f32.xlu0 %v1357_v61  ;;  %v1354_v62 = vsel %vm105_vm3, %v2500_v60, -inf  ;;  %v1539_v61 = vadd.f32 %v1538_v52, %v1537_v49 }
0x175d   :  { %1355 = vmax.xlane.f32.xlu1 %v1354_v62  ;;  %v1540_v62 = vsel %vm1536_vm14, %v2578_v59, 0.0 }
0x175e   :  { %v1541_v50 = vadd.f32 %v1540_v62, %v1539_v61 }
0x176e   :  { %1456 = vperm.xlu1 %1947, %v2509_v33  }
0x1772   :  { %1459 = vperm.xlu0 %1946, %v2515_v34   ;;  %1462 = vperm.xlu1 %1947, %v2520_v63   ;;  %v2617_v34 = vsel %vm1518_vm8, 1.0, %v2061_v16  ;;  %v2630_v63 = vsel %vm1519_vm9, 1.0, %v2061_v16 }
0x1779   :  { %v2526_v1 = vpop.xlane.xlu0 %1343 }
0x177a   :  { %v1362_v8 = vsub.f32 %v2452_v54, %v2526_v1 }
0x177c   :  { %v1372_v6 = vmul.f32 1.442695, %v1362_v8  ;;  %v1542_v8 = vsel %vm1536_vm14, %v2584_v2, 0.0 }
0x177d   :  { %v2532_v18 = vpop.xlane.xlu0 %1346  ;;  %v2538_v19 = vpop.xlane.xlu1 %1349 }
0x177e   :  { %v1363_v4 = vsub.f32 %v2454_v39, %v2532_v18  ;;  %v1364_v22 = vsub.f32 %v2458_v42, %v2538_v19  ;;  %2014 = vpow2.f32 %v1372_v6 }
0x177f   :  { %2016 = vpow2.f32 %v1370_v20 }
0x1780   :  { %v1374_v10 = vmul.f32 1.442695, %v1363_v4  ;;  %v1376_v12 = vmul.f32 1.442695, %v1364_v22  ;;  %v1543_v22 = vadd.f32 %v1542_v8, %v1541_v50 }
0x1781   :  { %v2544_v9 = vpop.xlane.xlu0 %1352  ;;  %v1442_v29 = vpop.permute.xlu1 %1441 }
0x1782   :  { %v1365_v11 = vsub.f32 %v2460_v43, %v2544_v9  ;;  %2018 = vpow2.f32 %v1374_v10  ;;  %vm1464_vm5 = vcmp.eq.s32.totalorder %v2191_v24, %v1442_v29 }
0x1783   :  { %2020 = vpow2.f32 %v1376_v12  ;;  %v1472_v10 = vsel %vm1464_vm5, %v2437_v46, 0.0  ;;  %v2604_v12 = vsel %vm1517_vm6, 1.0, %v2061_v16 }
0x1784   :  { %v1378_v13 = vmul.f32 1.442695, %v1365_v11  ;;  %v1544_v11 = vsel %vm1536_vm14, %v2592_v51, 0.0 }
0x1785   :  { %v1448_v32 = vpop.permute.xlu1 %1447  ;;  %v1545_v14 = vadd.f32 %v1544_v11, %v1543_v22 }
0x1786   :  { %2022 = vpow2.f32 %v1378_v13  ;;  %vm1466_vm1 = vcmp.eq.s32.totalorder %v2191_v24, %v1448_v32 }
0x1787   :  { %v1474_v46 = vsel %vm1466_vm1, %v2452_v54, 0.0 }
0x1788   :  { %v2015_v17 = vpop.eup %2014 }
0x1789   :  { %v2017_v21 = vpop.eup %2016  ;;  %v1390_v23 = vsel %vm105_vm3, %v2015_v17, 0.0  ;;  %v1445_v30 = vpop.permute.xlu0 %1444 }
0x178a   :  { %v1387_v56 = vsel %vm105_vm3, %v2017_v21, 0.0  ;;  %v1451_v37 = vpop.permute.xlu1 %1450  ;;  %vm1465_vm4 = vcmp.eq.s32.totalorder %v2191_v24, %v1445_v30 }
0x178b   :  { %v1473_v20 = vsel %vm1465_vm4, %v2447_v31, 0.0  ;;  %vm1467_vm7 = vcmp.eq.s32.totalorder %v2191_v24, %v1451_v37  ;;  %v1480_v31 = vsel %vm105_vm3, %v1472_v10, 0.0 }
0x178c   :  { %v2019_v48 = vpop.eup %2018  ;;  %v1483_v33 = vsel %vm105_vm3, %v1473_v20, 0.0  ;;  %v1475_v13 = vsel %vm1467_vm7, %v2454_v39, 0.0  ;;  %v1486_v39 = vsel %vm105_vm3, %v1474_v46, 0.0 }
0x178d   :  { %v2021_v58 = vpop.eup %2020  ;;  %v1393_v25 = vsel %vm105_vm3, %v2019_v48, 0.0  ;;  %v2554_v36 = vpop.permute.xlu0 %1453 }
0x178e   :  { %v1396_v27 = vsel %vm105_vm3, %v2021_v58, 0.0  ;;  %vm1468_vm11 = vcmp.eq.s32.totalorder %v2191_v24, %v2554_v36  ;;  %v1548_v58 = vsel %vm1536_vm14, %v2617_v34, 0.0 }
0x178f   :  { %v1476_v48 = vsel %vm1468_vm11, %v2458_v42, 0.0 }
0x1790   :  { %v2023_v26 = vpop.eup %2022 }
0x1791   :  { %1385 = vadd.xlane.f32.xlu0 %v1384_v15  ;;  %v1399_v28 = vsel %vm105_vm3, %v2023_v26, 0.0  ;;  %v1546_v15 = vsel %vm1536_vm14, %v2604_v12, 0.0  ;;  %v1492_v26 = vsel %vm105_vm3, %v1476_v48, 0.0 }
0x1795   :  { %1391 = vadd.xlane.f32.xlu0 %v1390_v23  ;;  %v1489_v23 = vsel %vm105_vm3, %v1475_v13, 0.0 }
0x1796   :  { %1388 = vadd.xlane.f32.xlu1 %v1387_v56  ;;  %v1547_v56 = vadd.f32 %v1546_v15, %v1545_v14 }
0x1798   :  { %v1549_v42 = vadd.f32 %v1548_v58, %v1547_v56 }
0x1799   :  { %1394 = vadd.xlane.f32.xlu0 %v1393_v25 }
0x179a   :  { %1397 = vadd.xlane.f32.xlu1 %v1396_v27 }
0x179d   :  { %1400 = vadd.xlane.f32.xlu0 %v1399_v28 }
0x17e9   :  { %v2556_v38 = vpop.xlane.xlu0 %1358 }
0x17ea   :  { %v1367_v35 = vsub.f32 %v2498_v57, %v2556_v38  ;;  %v2562_v40 = vpop.xlane.xlu1 %1355 }
0x17eb   :  { %v1366_v41 = vsub.f32 %v2500_v60, %v2562_v40 }
0x17ec   :  { %v1382_v44 = vmul.f32 1.442695, %v1367_v35 }
0x17ed   :  { %v1380_v55 = vmul.f32 1.442695, %v1366_v41 }
0x17ee   :  { %2024 = vpow2.f32 %v1382_v44  ;;  %v1457_v4 = vpop.permute.xlu1 %1456 }
0x17ef   :  { %2026 = vpow2.f32 %v1380_v55  ;;  %vm1469_vm10 = vcmp.eq.s32.totalorder %v2191_v24, %v1457_v4 }
0x17f0   :  { %v1477_v54 = vsel %vm1469_vm10, %v2460_v43, 0.0 }
0x17f1   :  { %v1460_v21 = vpop.permute.xlu0 %1459  ;;  %v1495_v25 = vsel %vm105_vm3, %v1477_v54, 0.0 }
0x17f2   :  { %v1463_v17 = vpop.permute.xlu1 %1462  ;;  %vm1470_vm13 = vcmp.eq.s32.totalorder %v2191_v24, %v1460_v21 }
0x17f3   :  { %vm1471_vm12 = vcmp.eq.s32.totalorder %v2191_v24, %v1463_v17  ;;  %v1478_v27 = vsel %vm1470_vm13, %v2500_v60, 0.0  ;;  %v1550_v24 = vsel %vm1536_vm14, %v2630_v63, 0.0 }
0x17f4   :  { %v1479_v43 = vsel %vm1471_vm12, %v2498_v57, 0.0  ;;  %v1498_v29 = vsel %vm105_vm3, %v1478_v27, 0.0  ;;  %v1551_v16 = vadd.f32 %v1550_v24, %v1549_v42 }
0x17f5   :  { %v1501_v28 = vsel %vm105_vm3, %v1479_v43, 0.0 }
0x17f8   :  { %v2025_v5 = vpop.eup %2024 }
0x17f9   :  { %v2027_v7 = vpop.eup %2026  ;;  %v1405_v6 = vsel %vm105_vm3, %v2025_v5, 0.0 }
0x17fa   :  { %1406 = vadd.xlane.f32.xlu0 %v1405_v6  ;;  %v1402_v53 = vsel %vm105_vm3, %v2027_v7, 0.0 }
0x17fb   :  { %1403 = vadd.xlane.f32.xlu1 %v1402_v53 }
0x17fe   :  { %1484 = vadd.xlane.f32.xlu0 %v1483_v33 }
0x17ff   :  { %1481 = vadd.xlane.f32.xlu1 %v1480_v31 }
0x1802   :  { %1490 = vadd.xlane.f32.xlu0 %v1489_v23 }
0x1803   :  { %1487 = vadd.xlane.f32.xlu1 %v1486_v39 }
0x1806   :  { %1496 = vadd.xlane.f32.xlu0 %v1495_v25 }
0x1807   :  { %1493 = vadd.xlane.f32.xlu1 %v1492_v26 }
0x180a   :  { %1502 = vadd.xlane.f32.xlu0 %v1501_v28 }
0x180b   :  { %1499 = vadd.xlane.f32.xlu1 %v1498_v29 }
0x180f   :  { %1552 = vadd.xlane.f32.xlu1 %v1551_v16 }
0x181e   :  { %v1386_v30 = vpop.xlane.xlu0 %1385 }
0x1822   :  { %v1392_v32 = vpop.xlane.xlu0 %1391 }
0x1823   :  { %v1389_v36 = vpop.xlane.xlu1 %1388 }
0x1824   :  { %2028 = vlog2.f32 %v1389_v36 }
0x1825   :  { %2030 = vlog2.f32 %v1386_v30 }
0x1826   :  { %v1395_v37 = vpop.xlane.xlu0 %1394 }
0x1827   :  { %2032 = vlog2.f32 %v1395_v37  ;;  %v1398_v60 = vpop.xlane.xlu1 %1397 }
0x1828   :  { %2034 = vlog2.f32 %v1392_v32 }
0x182a   :  { %v1401_v57 = vpop.xlane.xlu0 %1400 }
0x182b   :  { %2036 = vlog2.f32 %v1401_v57 }
0x182c   :  { %2038 = vlog2.f32 %v1398_v60 }
0x182e   :  { %v2029_v35 = vpop.eup %2028 }
0x182f   :  { %v2031_v41 = vpop.eup %2030  ;;  %v1411_v44 = vmul.f32 0.6931472, %v2029_v35 }
0x1830   :  { %v1409_v49 = vmul.f32 0.6931472, %v2031_v41 }
0x1831   :  { %v2033_v55 = vpop.eup %2032  ;;  %v1425_v5 = vadd.f32 %v1411_v44, %v2530_v3 }
0x1832   :  { %v2035_v61 = vpop.eup %2034  ;;  %v1415_v50 = vmul.f32 0.6931472, %v2033_v55  ;;  %v1424_v4 = vadd.f32 %v1409_v49, %v2524_v0 }
0x1833   :  { %v1413_v7 = vmul.f32 0.6931472, %v2035_v61 }
0x1834   :  { %v1427_v31 = vadd.f32 %v1415_v50, %v2532_v18 }
0x1835   :  { %v2037_v8 = vpop.eup %2036  ;;  %v1426_v3 = vadd.f32 %v1413_v7, %v2526_v1 }
0x1836   :  { %v2039_v53 = vpop.eup %2038  ;;  %v1419_v11 = vmul.f32 0.6931472, %v2037_v8 }
0x1837   :  { %v1417_v13 = vmul.f32 0.6931472, %v2039_v53 }
0x1838   :  { %v1429_v54 = vadd.f32 %v1419_v11, %v2544_v9 }
0x1839   :  { %v1428_v58 = vadd.f32 %v1417_v13, %v2538_v19 }
0x1887   :  { %v1407_v52 = vpop.xlane.xlu0 %1406 }
0x1888   :  { %2040 = vlog2.f32 %v1407_v52  ;;  %v1404_v62 = vpop.xlane.xlu1 %1403 }
0x1889   :  { %2042 = vlog2.f32 %v1404_v62 }
0x188b   :  { %v1485_v6 = vpop.xlane.xlu0 %1484 }
0x188c   :  { %v1505_v20 = vsub.f32 %v1425_v5, %v1485_v6  ;;  %v1482_v22 = vpop.xlane.xlu1 %1481 }
0x188d   :  { %v1504_v10 = vsub.f32 %v1424_v4, %v1482_v22 }
0x188e   :  { %v1563_v33 = vmul.f32 %v2570_v47, %v1505_v20 }
0x188f   :  { %v1562_v14 = vmul.f32 %v2567_v45, %v1504_v10  ;;  %v1491_v46 = vpop.xlane.xlu0 %1490 }
0x1890   :  { %v1507_v15 = vsub.f32 %v1427_v31, %v1491_v46  ;;  %v1488_v17 = vpop.xlane.xlu1 %1487  ;;  %v1571_v21 = vsel %vm1536_vm14, %v1563_v33, 0.0 }
0x1891   :  { %v1570_v0 = vsel %vm1536_vm14, %v1562_v14, 0.0  ;;  %v1506_v23 = vsub.f32 %v1426_v3, %v1488_v17 }
0x1892   :  { %v2041_v39 = vpop.eup %2040  ;;  %v1565_v18 = vmul.f32 %v2584_v2, %v1507_v15  ;;  %v1572_v25 = vadd.f32 %v1571_v21, %v1570_v0 }
0x1893   :  { %v2043_v48 = vpop.eup %2042  ;;  %v1423_v47 = vmul.f32 0.6931472, %v2041_v39  ;;  %v1564_v56 = vmul.f32 %v2578_v59, %v1506_v23  ;;  %v1497_v45 = vpop.xlane.xlu0 %1496 }
0x1894   :  { %v1421_v1 = vmul.f32 0.6931472, %v2043_v48  ;;  %v1509_v26 = vsub.f32 %v1429_v54, %v1497_v45  ;;  %v1494_v43 = vpop.xlane.xlu1 %1493  ;;  %v1575_v29 = vsel %vm1536_vm14, %v1565_v18, 0.0 }
0x1895   :  { %v1573_v27 = vsel %vm1536_vm14, %v1564_v56, 0.0  ;;  %v1508_v42 = vsub.f32 %v1428_v58, %v1494_v43  ;;  %v1431_v24 = vadd.f32 %v1423_v47, %v2556_v38 }
0x1896   :  { %v1574_v28 = vadd.f32 %v1573_v27, %v1572_v25  ;;  %v1430_v9 = vadd.f32 %v1421_v1, %v2562_v40  ;;  %v1567_v2 = vmul.f32 %v2604_v12, %v1509_v26 }
0x1897   :  { %v1566_v59 = vmul.f32 %v2592_v51, %v1508_v42  ;;  %v1503_v16 = vpop.xlane.xlu0 %1502 }
0x1898   :  { %v1576_v19 = vadd.f32 %v1575_v29, %v1574_v28  ;;  %v1511_v30 = vsub.f32 %v1431_v24, %v1503_v16  ;;  %v1500_v32 = vpop.xlane.xlu1 %1499  ;;  %v1579_v60 = vsel %vm1536_vm14, %v1567_v2, 0.0 }
0x1899   :  { %v1577_v36 = vsel %vm1536_vm14, %v1566_v59, 0.0  ;;  %v1510_v37 = vsub.f32 %v1430_v9, %v1500_v32 }
0x189a   :  { %v1578_v57 = vadd.f32 %v1577_v36, %v1576_v19  ;;  %v1569_v38 = vmul.f32 %v2630_v63, %v1511_v30 }
0x189b   :  { %v1568_v40 = vmul.f32 %v2617_v34, %v1510_v37 }
0x189c   :  { %v1580_v35 = vadd.f32 %v1579_v60, %v1578_v57  ;;  %v1553_v41 = vpop.xlane.xlu1 %1552  ;;  %v1583_v55 = vsel %vm1536_vm14, %v1569_v38, 0.0 }
0x189d   :  { %v1581_v12 = vsel %vm1536_vm14, %v1568_v40, 0.0  ;;  %v1554_v44 = vrot.slane %v1553_v41, 4 }
0x189e   :  { %v1582_v51 = vadd.f32 %v1581_v12, %v1580_v35 }
0x189f   :  { %v1555_v49 = vadd.f32 %v1554_v44, %v1553_v41 }
0x18a0   :  { %v1584_v52 = vadd.f32 %v1583_v55, %v1582_v51 }
0x18a1   :  { %v1556_v61 = vrot.slane %v1555_v49, 2 }
0x18a2   :  { %1585 = vadd.xlane.f32.xlu0 %v1584_v52 }
0x18a3   :  { %v1557_v62 = vadd.f32 %v1556_v61, %v1555_v49 }
0x18a5   :  { %v1558_v50 = vrot.slane %v1557_v62, 1 }
0x18a7   :  { %v1559_v5 = vadd.f32 %v1558_v50, %v1557_v62 }
0x18a9   :  { %1932 = vpush %v1559_v5 }
0x18da   :  { %s1933_s1 = spop %1932 }
0x18db   :  { %s1561_s28 = smax.f32 %s2064_s27, %s1933_s1 }
0x18dc   :  { %v1594_v34 = vstv %s1561_s28 }
0x18dd   :  { %2044 = vrcp.f32 %v1594_v34 }
0x18e7   :  { %v2045_v22 = vpop.eup %2044 }
0x192f   :  { %v1586_v63 = vpop.xlane.xlu0 %1585 }
0x1930   :  { %v1587_v8 = vrot.slane %v1586_v63, 4 }
0x1932   :  { %v1588_v7 = vadd.f32 %v1587_v8, %v1586_v63 }
0x1934   :  { %v1589_v6 = vrot.slane %v1588_v7, 2 }
0x1936   :  { %v1590_v4 = vadd.f32 %v1589_v6, %v1588_v7 }
0x1938   :  { %v1591_v53 = vrot.slane %v1590_v4, 1 }
0x193a   :  { %v1592_v20 = vadd.f32 %v1591_v53, %v1590_v4 }
0x193c   :  { %1934 = vpush %v1592_v20 }
0x193d   :  { %1936 = vpush %v2045_v22 }
0x196d   :  { %s1935_s29 = spop %1934 }
0x196e   :  { %s1937_s0 = spop %1936 }
0x196f   :  { %s1597_s30 = smul.f32 %s1937_s0, %s1935_s29 }
0x1971   :  { %1599 = sst [smem:[#allocation2]] %s1597_s30 }
0x1972   :  { %2055 = shalt.err (!%p2052_p2)
}
0x1973   :  { %s2065_s15 = smov [#allocation2]  }
0x1974   :  { %1607 = dma.smem_to_hbm %s2065_s15, 16, %s2685_s10, [#allocation3]  }
0x1975   :  { %2056 = dma.done.wait [#allocation3], 16  }
0x1976   :  { %2057 = vsyncadd [#allocation3], 4294967280 }
0x1977   :  { %1611 = sfence }
0x1978   :  { %1612 = vsyncpa [#allocation3], 1 }

</bundles_post_ra>
